<compile_context>
chip_gen: v6e
topology: v6e:2x2x1
jax: 0.10.0
libtpu: 0.0.40
codegen_flags: <defaults>
</compile_context>

<pallas_src>
import functools

import jax
import jax.numpy as jnp
from jax.experimental import pallas as pl
from jax.experimental.pallas import tpu as pltpu

BN_EPS = 1e-5


# --------------------------------------------------------------------------
# Kernel: one stage = Linear (BN pre-folded into W/b) -> ReLU/sigmoid
#         [-> accumulate BN sum/sumsq across batch tiles].
# --------------------------------------------------------------------------
def _stage_kernel(hin_ref, w_ref, b_ref, hout_ref, *maybe_stats,
                  batch_major_in, stats_out, act,
                  inv_n, valid_n, tile_b, need_mask):
    stats_ref = maybe_stats[0] if stats_out else None

    w = w_ref[...]                                   # (f_out, f_in) bf16

    if batch_major_in:
        # Stage 1: x tile in natural (tb, f_in) layout; contract dim 1 of W
        # with dim 1 of the tile -> (f_out, tb), i.e. the transpose is fused.
        h = hin_ref[...].astype(jnp.bfloat16)        # (tb, f_in)
        acc = jax.lax.dot_general(
            w, h, (((1,), (1,)), ((), ())),
            preferred_element_type=jnp.float32)      # (f_out, tb)
    else:
        # Later stages: bf16 feature-major tile feeds the MXU directly
        # (BN already folded into W/b, so no per-element normalize).
        acc = jnp.dot(w, hin_ref[...],
                      preferred_element_type=jnp.float32)

    acc = acc + b_ref[...]                           # (f_out, 1) lane-broadcast

    if act == "relu":
        a = jnp.maximum(acc, 0.0)
    else:                                            # sigmoid (f32 EUP)
        a = 1.0 / (1.0 + jnp.exp(-acc))

    hout_ref[...] = a.astype(hout_ref.dtype)         # bf16 store for h1..h3

    if stats_out:
        t = pl.program_id(0)

        @pl.when(t == 0)
        def _init():
            stats_ref[...] = jnp.zeros_like(stats_ref)

        am = a
        if need_mask:
            # Mask padded batch columns out of the BN statistics.
            col = jax.lax.broadcasted_iota(jnp.int32, a.shape, 1) + t * tile_b
            am = jnp.where(col < valid_n, a, 0.0)

        # Single vector RMW of [sum, sumsq] into the resident (f_out, 2) output.
        stats_ref[...] += jnp.concatenate(
            [jnp.sum(am, axis=1, keepdims=True),
             jnp.sum(am * am, axis=1, keepdims=True)], axis=1)

        @pl.when(t == pl.num_programs(0) - 1)
        def _finalize():
            st = stats_ref[...]
            mean = st[:, 0:1] * inv_n
            var = jnp.maximum(st[:, 1:2] * inv_n - mean * mean, 0.0)
            stats_ref[...] = jnp.concatenate(
                [mean, jax.lax.rsqrt(var + BN_EPS)], axis=1)


def _pick_tile(batch, tile_b):
    """Largest lane-aligned batch tile that divides `batch`."""
    for cand in (tile_b, 16384, 8192, 4096, 2048, 1024, 512, 256, 128):
        if 0 < cand <= batch and batch % cand == 0 and cand % 128 == 0:
            return cand
    return batch     # small batch: single full block (always a legal block)


def _stage(h_in, w, b_col, *, layer, tile_b, valid_n):
    """Build and run one pallas_call stage. Returns (h_out, stats|None)."""
    f_out, f_in = w.shape
    batch_major = (layer == 1)
    batch = h_in.shape[0] if batch_major else h_in.shape[1]
    tb = _pick_tile(batch, tile_b)
    grid = (batch // tb,)
    stats_out = layer < 4
    need_mask = stats_out and (valid_n != batch)

    kern = functools.partial(
        _stage_kernel,
        batch_major_in=batch_major, stats_out=stats_out,
        act="relu" if layer < 4 else "sigmoid",
        inv_n=1.0 / valid_n, valid_n=valid_n, tile_b=tb, need_mask=need_mask)

    hin_spec = (pl.BlockSpec((tb, f_in), lambda t: (t, 0)) if batch_major
                else pl.BlockSpec((f_in, tb), lambda t: (0, t)))
    in_specs = [
        hin_spec,
        pl.BlockSpec((f_out, f_in), lambda t: (0, 0)),   # folded weight (resident)
        pl.BlockSpec((f_out, 1), lambda t: (0, 0)),      # folded bias (resident)
    ]

    out_dtype = jnp.bfloat16 if stats_out else jnp.float32
    out_shape = [jax.ShapeDtypeStruct((f_out, batch), out_dtype)]
    out_specs = [pl.BlockSpec((f_out, tb), lambda t: (0, t))]
    if stats_out:
        out_shape.append(jax.ShapeDtypeStruct((f_out, 2), jnp.float32))
        out_specs.append(pl.BlockSpec((f_out, 2), lambda t: (0, 0)))

    outs = pl.pallas_call(
        kern,
        out_shape=tuple(out_shape),
        grid=grid,
        in_specs=in_specs,
        out_specs=tuple(out_specs),
        compiler_params=pltpu.CompilerParams(
            # stats accumulation makes the batch axis a reduction ("arbitrary");
            # the last stage has no reduction -> "parallel".
            dimension_semantics=("arbitrary",) if stats_out else ("parallel",),
            vmem_limit_bytes=32 * 1024 * 1024),
    )(h_in, w, b_col)

    return (outs[0], outs[1]) if stats_out else (outs[0], None)


def _fold_bn(w_bf16, b_col, gamma, beta, stats):
    """Fold BN(mean, inv_std, gamma, beta) of the previous layer's output into
    this layer's weights/bias.  O(f_out*f_in) <= 32x32 — negligible XLA work."""
    mean, inv_std = stats[:, 0], stats[:, 1]          # (f_in,)
    s = gamma * inv_std                               # (f_in,)
    shift = beta - mean * s                           # (f_in,)
    w32 = w_bf16.astype(jnp.float32)
    w_fold = (w32 * s[None, :]).astype(jnp.bfloat16)  # column scale
    b_fold = b_col + (w32 @ shift)[:, None]           # (f_out, 1)
    return w_fold, b_fold


@functools.partial(jax.jit, static_argnames=("tile_b",))
def net_forward(x, params, tile_b=8192):
    """x: (B, inp) as in PyTorch. Returns (B, out_size) sigmoid outputs."""
    valid_n = x.shape[0]
    x = x.astype(jnp.float32)
    batch = valid_n
    if batch > 128 and batch % 128 != 0:
        # Pad ragged large batches to a lane-aligned multiple of 128; padded
        # columns are masked out of the BN statistics inside the kernels.
        pad = (-batch) % 128
        x = jnp.pad(x, ((0, pad), (0, 0)))
        batch = batch + pad

    h1, st1 = _stage(x, params["w1"], params["b1"],
                     layer=1, tile_b=tile_b, valid_n=valid_n)
    w2f, b2f = _fold_bn(params["w2"], params["b2"],
                        params["g1"], params["be1"], st1)
    h2, st2 = _stage(h1, w2f, b2f, layer=2, tile_b=tile_b, valid_n=valid_n)
    w3f, b3f = _fold_bn(params["w3"], params["b3"],
                        params["g2"], params["be2"], st2)
    h3, st3 = _stage(h2, w3f, b3f, layer=3, tile_b=tile_b, valid_n=valid_n)
    w4f, b4f = _fold_bn(params["w4"], params["b4"],
                        params["g3"], params["be3"], st3)
    y, _ = _stage(h3, w4f, b4f, layer=4, tile_b=tile_b, valid_n=valid_n)
    return y[:, :valid_n].T                           # back to (B, out_size)


# --------------------------------------------------------------------------
# Parameters
# --------------------------------------------------------------------------
def init_params(key, inp_size, out_size):
    """PyTorch-style defaults: Linear U(-1/sqrt(fan_in), ..), BN gamma=1 beta=0."""
    dims = [(inp_size, 32), (32, 16), (16, 8), (8, out_size)]
    keys = jax.random.split(key, 2 * len(dims))
    raw = {}
    for i, (fan_in, fan_out) in enumerate(dims, start=1):
        bound = 1.0 / (fan_in ** 0.5)
        raw[f"w{i}"] = jax.random.uniform(
            keys[2 * (i - 1)], (fan_out, fan_in), jnp.float32, -bound, bound)
        raw[f"b{i}"] = jax.random.uniform(
            keys[2 * (i - 1) + 1], (fan_out,), jnp.float32, -bound, bound)
        if i < 4:
            raw[f"g{i}"] = jnp.ones((fan_out,), jnp.float32)
            raw[f"be{i}"] = jnp.zeros((fan_out,), jnp.float32)
    return raw


def pack_params(raw):
    """Pre-cast weights to bf16 (MXU dtype), biases as (f,1) f32 columns."""
    packed = {}
    for i in range(1, 5):
        packed[f"w{i}"] = raw[f"w{i}"].astype(jnp.bfloat16)
        packed[f"b{i}"] = raw[f"b{i}"][:, None].astype(jnp.float32)
        if i < 4:
            packed[f"g{i}"] = raw[f"g{i}"].astype(jnp.float32)
            packed[f"be{i}"] = raw[f"be{i}"].astype(jnp.float32)
    return packed


# --------------------------------------------------------------------------
# References
# --------------------------------------------------------------------------
def reference_forward_f32(x, raw):
    """Straight f32 reference matching the PyTorch forward (training-mode BN)."""
    def lin(h, w, b):
        return h @ w.T + b[None, :]

    def bn(h, g, be):
        m = h.mean(0, keepdims=True)
        v = ((h - m) ** 2).mean(0, keepdims=True)
        return (h - m) * jax.lax.rsqrt(v + BN_EPS) * g[None, :] + be[None, :]

    h = bn(jnp.maximum(lin(x, raw["w1"], raw["b1"]), 0.0), raw["g1"], raw["be1"])
    h = bn(jnp.maximum(lin(h, raw["w2"], raw["b2"]), 0.0), raw["g2"], raw["be2"])
    h = bn(jnp.maximum(lin(h, raw["w3"], raw["b3"]), 0.0), raw["g3"], raw["be3"])
    return jax.nn.sigmoid(lin(h, raw["w4"], raw["b4"]))


def reference_forward_kernel_like(x, raw):
    """Mimics kernel numerics: bf16 weights + bf16-stored activations,
    f32 accumulation, BN folded into W'/b'."""
    def stats(a):
        mean = a.mean(0)
        var = jnp.maximum((a * a).mean(0) - mean * mean, 0.0)
        return mean, jax.lax.rsqrt(var + BN_EPS)

    def lin(h_bf, w_bf, b):
        return jax.lax.dot_general(h_bf, w_bf, (((1,), (1,)), ((), ())),
                                   preferred_element_type=jnp.float32) + b[None, :]

    def fold(w_bf, b, g, be, mean, inv_std):
        s = g * inv_std
        w32 = w_bf.astype(jnp.float32)
        return (w32 * s[None, :]).astype(jnp.bfloat16), b + w32 @ (be - mean * s)

    h = x.astype(jnp.bfloat16)
    a1 = jnp.maximum(lin(h, raw["w1"].astype(jnp.bfloat16), raw["b1"]), 0.0)
    m1, i1 = stats(a1)
    w2f, b2f = fold(raw["w2"].astype(jnp.bfloat16), raw["b2"],
                    raw["g1"], raw["be1"], m1, i1)
    a2 = jnp.maximum(lin(a1.astype(jnp.bfloat16), w2f, b2f), 0.0)
    m2, i2 = stats(a2)
    w3f, b3f = fold(raw["w3"].astype(jnp.bfloat16), raw["b3"],
                    raw["g2"], raw["be2"], m2, i2)
    a3 = jnp.maximum(lin(a2.astype(jnp.bfloat16), w3f, b3f), 0.0)
    m3, i3 = stats(a3)
    w4f, b4f = fold(raw["w4"].astype(jnp.bfloat16), raw["b4"],
                    raw["g3"], raw["be3"], m3, i3)
    return jax.nn.sigmoid(lin(a3.astype(jnp.bfloat16), w4f, b4f))


if __name__ == "__main__":
    inp_size, out_size, batch = 16, 4, 256
    key = jax.random.PRNGKey(0)
    kx, kp = jax.random.split(key)

    x = jax.random.normal(kx, (batch, inp_size), jnp.float32)
    raw = init_params(kp, inp_size, out_size)
    packed = pack_params(raw)

    # tile_b=128 -> 2 batch tiles, exercising the cross-tile BN stats reduction.
    out = jax.block_until_ready(net_forward(x, packed, tile_b=128))

    ref_k = reference_forward_kernel_like(x, raw)   # same precision/structure
    ref_f = reference_forward_f32(x, raw)           # full-precision math

    assert out.shape == (batch, out_size), out.shape
    err_k = float(jnp.max(jnp.abs(out - ref_k)))
    err_f = float(jnp.max(jnp.abs(out - ref_f)))
    assert err_k < 5e-3, f"kernel-like ref mismatch: {err_k}"
    assert err_f < 5e-2, f"f32 ref mismatch: {err_f}"
    print("KERNEL_OK")
</pallas_src>

<mosaic_0001>
module attributes {stable_mosaic.version = 11 : i64} {
  func.func @_stage_kernel(%arg0: i32, %arg1: memref<128x16xf32, #tpu.memory_space<vmem>>, %arg2: memref<32x16xbf16, #tpu.memory_space<vmem>>, %arg3: memref<32x1xf32, #tpu.memory_space<vmem>>, %arg4: memref<32x128xbf16, #tpu.memory_space<vmem>>, %arg5: memref<32x2xf32, #tpu.memory_space<vmem>>) attributes {dimension_semantics = [#tpu.dimension_semantics<arbitrary>], iteration_bounds = array<i64: 2>, scalar_prefetch = 0 : i64, scratch_operands = 0 : i64, tpu.core_type = #tpu.core_type<tc>, window_params = [{transform_indices = @transform_0, window_bounds = array<i64: 128, 16>}, {pipeline_mode = #tpu.pipeline_mode<synchronous>, transform_indices = @transform_1, window_bounds = array<i64: 32, 16>}, {pipeline_mode = #tpu.pipeline_mode<synchronous>, transform_indices = @transform_2, window_bounds = array<i64: 32, 1>}, {transform_indices = @transform_3, window_bounds = array<i64: 32, 128>}, {pipeline_mode = #tpu.pipeline_mode<synchronous>, transform_indices = @transform_4, window_bounds = array<i64: 32, 2>}]} {
    %c0 = arith.constant 0 : index
    %c0_0 = arith.constant 0 : index
    %0 = vector.load %arg2[%c0, %c0_0] : memref<32x16xbf16, #tpu.memory_space<vmem>>, vector<32x16xbf16>
    %c0_1 = arith.constant 0 : index
    %c0_2 = arith.constant 0 : index
    %1 = vector.load %arg1[%c0_1, %c0_2] : memref<128x16xf32, #tpu.memory_space<vmem>>, vector<128x16xf32>
    %2 = arith.truncf %1 : vector<128x16xf32> to vector<128x16xbf16>
    %cst = arith.constant dense<0.000000e+00> : vector<32x128xf32>
    %3 = tpu.matmul %0, %2, %cst {dimension_numbers = #tpu.dot_dimension_numbers<[1], [1], [0], [0], [0, 0, 1, 0], [], []>} : vector<32x16xbf16>, vector<128x16xbf16>, vector<32x128xf32> -> vector<32x128xf32>
    %c0_3 = arith.constant 0 : index
    %c0_4 = arith.constant 0 : index
    %4 = vector.load %arg3[%c0_3, %c0_4] : memref<32x1xf32, #tpu.memory_space<vmem>>, vector<32x1xf32>
    %5 = vector.broadcast %4 : vector<32x1xf32> to vector<32x128xf32>
    %6 = arith.addf %3, %5 : vector<32x128xf32>
    %cst_5 = arith.constant 0.000000e+00 : f32
    %7 = vector.broadcast %cst_5 : f32 to vector<32x128xf32>
    %8 = arith.maximumf %6, %7 : vector<32x128xf32>
    %9 = arith.truncf %8 : vector<32x128xf32> to vector<32x128xbf16>
    %c0_6 = arith.constant 0 : index
    %c0_7 = arith.constant 0 : index
    %10 = vector.load %arg4[%c0_6, %c0_7] : memref<32x128xbf16, #tpu.memory_space<vmem>>, vector<32x128xbf16>
    tpu.vector_store %arg4[%c0_6, %c0_7], %9 {strides = array<i32>} : memref<32x128xbf16, #tpu.memory_space<vmem>>, vector<32x128xbf16>,
    %c0_i32 = arith.constant 0 : i32
    %11 = arith.cmpi eq, %arg0, %c0_i32 : i32
    %12 = arith.extui %11 : i1 to i32
    %c0_i32_8 = arith.constant 0 : i32
    %13 = arith.cmpi ne, %12, %c0_i32_8 : i32
    scf.if %13 {
      %cst_16 = arith.constant 0.000000e+00 : f32
      %26 = vector.broadcast %cst_16 : f32 to vector<32x2xf32>
      %c0_17 = arith.constant 0 : index
      %c0_18 = arith.constant 0 : index
      %27 = vector.load %arg5[%c0_17, %c0_18] : memref<32x2xf32, #tpu.memory_space<vmem>>, vector<32x2xf32>
      tpu.vector_store %arg5[%c0_17, %c0_18], %26 {strides = array<i32>} : memref<32x2xf32, #tpu.memory_space<vmem>>, vector<32x2xf32>,
    } else {
    }
    %c0_9 = arith.constant 0 : index
    %c0_10 = arith.constant 0 : index
    %14 = vector.load %arg5[%c0_9, %c0_10] : memref<32x2xf32, #tpu.memory_space<vmem>>, vector<32x2xf32>
    %cst_11 = arith.constant dense<0.000000e+00> : vector<32xf32>
    %15 = vector.multi_reduction <add>, %8, %cst_11 [1] : vector<32x128xf32> to vector<32xf32>
    %16 = vector.shape_cast %15 : vector<32xf32> to vector<32x1xf32>
    %17 = arith.mulf %8, %8 : vector<32x128xf32>
    %cst_12 = arith.constant dense<0.000000e+00> : vector<32xf32>
    %18 = vector.multi_reduction <add>, %17, %cst_12 [1] : vector<32x128xf32> to vector<32xf32>
    %19 = vector.shape_cast %18 : vector<32xf32> to vector<32x1xf32>
    %20 = tpu.concatenate %16, %19 in 1 : vector<32x1xf32>, vector<32x1xf32> -> vector<32x2xf32>
    %21 = arith.addf %14, %20 : vector<32x2xf32>
    %c0_13 = arith.constant 0 : index
    %c0_14 = arith.constant 0 : index
    %22 = vector.load %arg5[%c0_13, %c0_14] : memref<32x2xf32, #tpu.memory_space<vmem>>, vector<32x2xf32>
    tpu.vector_store %arg5[%c0_13, %c0_14], %21 {strides = array<i32>} : memref<32x2xf32, #tpu.memory_space<vmem>>, vector<32x2xf32>,
    %c1_i32 = arith.constant 1 : i32
    %23 = arith.cmpi eq, %arg0, %c1_i32 : i32
    %24 = arith.extui %23 : i1 to i32
    %c0_i32_15 = arith.constant 0 : i32
    %25 = arith.cmpi ne, %24, %c0_i32_15 : i32
    scf.if %25 {
      %c0_16 = arith.constant 0 : index
      %c0_17 = arith.constant 0 : index
      %26 = vector.load %arg5[%c0_16, %c0_17] : memref<32x2xf32, #tpu.memory_space<vmem>>, vector<32x2xf32>
      %27 = vector.extract_strided_slice %26 {offsets = [0, 0], sizes = [32, 1], strides = [1, 1]} : vector<32x2xf32> to vector<32x1xf32>
      %cst_18 = arith.constant 3.906250e-03 : f32
      %28 = vector.broadcast %cst_18 : f32 to vector<32x1xf32>
      %29 = arith.mulf %27, %28 : vector<32x1xf32>
      %30 = vector.extract_strided_slice %26 {offsets = [0, 1], sizes = [32, 1], strides = [1, 1]} : vector<32x2xf32> to vector<32x1xf32>
      %cst_19 = arith.constant 3.906250e-03 : f32
      %31 = vector.broadcast %cst_19 : f32 to vector<32x1xf32>
      %32 = arith.mulf %30, %31 : vector<32x1xf32>
      %33 = arith.mulf %29, %29 : vector<32x1xf32>
      %34 = arith.subf %32, %33 : vector<32x1xf32>
      %cst_20 = arith.constant 0.000000e+00 : f32
      %35 = vector.broadcast %cst_20 : f32 to vector<32x1xf32>
      %36 = arith.maximumf %34, %35 : vector<32x1xf32>
      %cst_21 = arith.constant 9.99999974E-6 : f32
      %37 = vector.broadcast %cst_21 : f32 to vector<32x1xf32>
      %38 = arith.addf %36, %37 : vector<32x1xf32>
      %39 = math.rsqrt %38 : vector<32x1xf32>
      %40 = tpu.concatenate %29, %39 in 1 : vector<32x1xf32>, vector<32x1xf32> -> vector<32x2xf32>
      %c0_22 = arith.constant 0 : index
      %c0_23 = arith.constant 0 : index
      %41 = vector.load %arg5[%c0_22, %c0_23] : memref<32x2xf32, #tpu.memory_space<vmem>>, vector<32x2xf32>
      tpu.vector_store %arg5[%c0_22, %c0_23], %40 {strides = array<i32>} : memref<32x2xf32, #tpu.memory_space<vmem>>, vector<32x2xf32>,
    } else {
    }
    return
  }
  func.func @transform_0(%arg0: i32) -> (i32, i32) {
    %c0_i32 = arith.constant 0 : i32
    %c0_i32_0 = arith.constant 0 : i32
    return %arg0, %c0_i32 : i32, i32
  }
  func.func @transform_1(%arg0: i32) -> (i32, i32) {
    %c0_i32 = arith.constant 0 : i32
    %c0_i32_0 = arith.constant 0 : i32
    %c0_i32_1 = arith.constant 0 : i32
    return %c0_i32, %c0_i32_0 : i32, i32
  }
  func.func @transform_2(%arg0: i32) -> (i32, i32) {
    %c0_i32 = arith.constant 0 : i32
    %c0_i32_0 = arith.constant 0 : i32
    %c0_i32_1 = arith.constant 0 : i32
    return %c0_i32, %c0_i32_0 : i32, i32
  }
  func.func @transform_3(%arg0: i32) -> (i32, i32) {
    %c0_i32 = arith.constant 0 : i32
    %c0_i32_0 = arith.constant 0 : i32
    return %c0_i32, %arg0 : i32, i32
  }
  func.func @transform_4(%arg0: i32) -> (i32, i32) {
    %c0_i32 = arith.constant 0 : i32
    %c0_i32_0 = arith.constant 0 : i32
    %c0_i32_1 = arith.constant 0 : i32
    return %c0_i32, %c0_i32_0 : i32, i32
  }
}

module attributes {stable_mosaic.version = 11 : i64} {
  func.func @_stage_kernel(%arg0: i32, %arg1: memref<32x128xbf16, #tpu.memory_space<vmem>>, %arg2: memref<16x32xbf16, #tpu.memory_space<vmem>>, %arg3: memref<16x1xf32, #tpu.memory_space<vmem>>, %arg4: memref<16x128xbf16, #tpu.memory_space<vmem>>, %arg5: memref<16x2xf32, #tpu.memory_space<vmem>>) attributes {dimension_semantics = [#tpu.dimension_semantics<arbitrary>], iteration_bounds = array<i64: 2>, scalar_prefetch = 0 : i64, scratch_operands = 0 : i64, tpu.core_type = #tpu.core_type<tc>, window_params = [{transform_indices = @transform_0, window_bounds = array<i64: 32, 128>}, {pipeline_mode = #tpu.pipeline_mode<synchronous>, transform_indices = @transform_1, window_bounds = array<i64: 16, 32>}, {pipeline_mode = #tpu.pipeline_mode<synchronous>, transform_indices = @transform_2, window_bounds = array<i64: 16, 1>}, {transform_indices = @transform_3, window_bounds = array<i64: 16, 128>}, {pipeline_mode = #tpu.pipeline_mode<synchronous>, transform_indices = @transform_4, window_bounds = array<i64: 16, 2>}]} {
    %c0 = arith.constant 0 : index
    %c0_0 = arith.constant 0 : index
    %0 = vector.load %arg2[%c0, %c0_0] : memref<16x32xbf16, #tpu.memory_space<vmem>>, vector<16x32xbf16>
    %c0_1 = arith.constant 0 : index
    %c0_2 = arith.constant 0 : index
    %1 = vector.load %arg1[%c0_1, %c0_2] : memref<32x128xbf16, #tpu.memory_space<vmem>>, vector<32x128xbf16>
    %cst = arith.constant dense<0.000000e+00> : vector<16x128xf32>
    %2 = tpu.matmul %0, %1, %cst {dimension_numbers = #tpu.dot_dimension_numbers<[1], [0], [0], [1], [0, 0, 1, 1], [], []>} : vector<16x32xbf16>, vector<32x128xbf16>, vector<16x128xf32> -> vector<16x128xf32>
    %c0_3 = arith.constant 0 : index
    %c0_4 = arith.constant 0 : index
    %3 = vector.load %arg3[%c0_3, %c0_4] : memref<16x1xf32, #tpu.memory_space<vmem>>, vector<16x1xf32>
    %4 = vector.broadcast %3 : vector<16x1xf32> to vector<16x128xf32>
    %5 = arith.addf %2, %4 : vector<16x128xf32>
    %cst_5 = arith.constant 0.000000e+00 : f32
    %6 = vector.broadcast %cst_5 : f32 to vector<16x128xf32>
    %7 = arith.maximumf %5, %6 : vector<16x128xf32>
    %8 = arith.truncf %7 : vector<16x128xf32> to vector<16x128xbf16>
    %c0_6 = arith.constant 0 : index
    %c0_7 = arith.constant 0 : index
    %9 = vector.load %arg4[%c0_6, %c0_7] : memref<16x128xbf16, #tpu.memory_space<vmem>>, vector<16x128xbf16>
    tpu.vector_store %arg4[%c0_6, %c0_7], %8 {strides = array<i32>} : memref<16x128xbf16, #tpu.memory_space<vmem>>, vector<16x128xbf16>,
    %c0_i32 = arith.constant 0 : i32
    %10 = arith.cmpi eq, %arg0, %c0_i32 : i32
    %11 = arith.extui %10 : i1 to i32
    %c0_i32_8 = arith.constant 0 : i32
    %12 = arith.cmpi ne, %11, %c0_i32_8 : i32
    scf.if %12 {
      %cst_16 = arith.constant 0.000000e+00 : f32
      %25 = vector.broadcast %cst_16 : f32 to vector<16x2xf32>
      %c0_17 = arith.constant 0 : index
      %c0_18 = arith.constant 0 : index
      %26 = vector.load %arg5[%c0_17, %c0_18] : memref<16x2xf32, #tpu.memory_space<vmem>>, vector<16x2xf32>
      tpu.vector_store %arg5[%c0_17, %c0_18], %25 {strides = array<i32>} : memref<16x2xf32, #tpu.memory_space<vmem>>, vector<16x2xf32>,
    } else {
    }
    %c0_9 = arith.constant 0 : index
    %c0_10 = arith.constant 0 : index
    %13 = vector.load %arg5[%c0_9, %c0_10] : memref<16x2xf32, #tpu.memory_space<vmem>>, vector<16x2xf32>
    %cst_11 = arith.constant dense<0.000000e+00> : vector<16xf32>
    %14 = vector.multi_reduction <add>, %7, %cst_11 [1] : vector<16x128xf32> to vector<16xf32>
    %15 = vector.shape_cast %14 : vector<16xf32> to vector<16x1xf32>
    %16 = arith.mulf %7, %7 : vector<16x128xf32>
    %cst_12 = arith.constant dense<0.000000e+00> : vector<16xf32>
    %17 = vector.multi_reduction <add>, %16, %cst_12 [1] : vector<16x128xf32> to vector<16xf32>
    %18 = vector.shape_cast %17 : vector<16xf32> to vector<16x1xf32>
    %19 = tpu.concatenate %15, %18 in 1 : vector<16x1xf32>, vector<16x1xf32> -> vector<16x2xf32>
    %20 = arith.addf %13, %19 : vector<16x2xf32>
    %c0_13 = arith.constant 0 : index
    %c0_14 = arith.constant 0 : index
    %21 = vector.load %arg5[%c0_13, %c0_14] : memref<16x2xf32, #tpu.memory_space<vmem>>, vector<16x2xf32>
    tpu.vector_store %arg5[%c0_13, %c0_14], %20 {strides = array<i32>} : memref<16x2xf32, #tpu.memory_space<vmem>>, vector<16x2xf32>,
    %c1_i32 = arith.constant 1 : i32
    %22 = arith.cmpi eq, %arg0, %c1_i32 : i32
    %23 = arith.extui %22 : i1 to i32
    %c0_i32_15 = arith.constant 0 : i32
    %24 = arith.cmpi ne, %23, %c0_i32_15 : i32
    scf.if %24 {
      %c0_16 = arith.constant 0 : index
      %c0_17 = arith.constant 0 : index
      %25 = vector.load %arg5[%c0_16, %c0_17] : memref<16x2xf32, #tpu.memory_space<vmem>>, vector<16x2xf32>
      %26 = vector.extract_strided_slice %25 {offsets = [0, 0], sizes = [16, 1], strides = [1, 1]} : vector<16x2xf32> to vector<16x1xf32>
      %cst_18 = arith.constant 3.906250e-03 : f32
      %27 = vector.broadcast %cst_18 : f32 to vector<16x1xf32>
      %28 = arith.mulf %26, %27 : vector<16x1xf32>
      %29 = vector.extract_strided_slice %25 {offsets = [0, 1], sizes = [16, 1], strides = [1, 1]} : vector<16x2xf32> to vector<16x1xf32>
      %cst_19 = arith.constant 3.906250e-03 : f32
      %30 = vector.broadcast %cst_19 : f32 to vector<16x1xf32>
      %31 = arith.mulf %29, %30 : vector<16x1xf32>
      %32 = arith.mulf %28, %28 : vector<16x1xf32>
      %33 = arith.subf %31, %32 : vector<16x1xf32>
      %cst_20 = arith.constant 0.000000e+00 : f32
      %34 = vector.broadcast %cst_20 : f32 to vector<16x1xf32>
      %35 = arith.maximumf %33, %34 : vector<16x1xf32>
      %cst_21 = arith.constant 9.99999974E-6 : f32
      %36 = vector.broadcast %cst_21 : f32 to vector<16x1xf32>
      %37 = arith.addf %35, %36 : vector<16x1xf32>
      %38 = math.rsqrt %37 : vector<16x1xf32>
      %39 = tpu.concatenate %28, %38 in 1 : vector<16x1xf32>, vector<16x1xf32> -> vector<16x2xf32>
      %c0_22 = arith.constant 0 : index
      %c0_23 = arith.constant 0 : index
      %40 = vector.load %arg5[%c0_22, %c0_23] : memref<16x2xf32, #tpu.memory_space<vmem>>, vector<16x2xf32>
      tpu.vector_store %arg5[%c0_22, %c0_23], %39 {strides = array<i32>} : memref<16x2xf32, #tpu.memory_space<vmem>>, vector<16x2xf32>,
    } else {
    }
    return
  }
  func.func @transform_0(%arg0: i32) -> (i32, i32) {
    %c0_i32 = arith.constant 0 : i32
    %c0_i32_0 = arith.constant 0 : i32
    return %c0_i32, %arg0 : i32, i32
  }
  func.func @transform_1(%arg0: i32) -> (i32, i32) {
    %c0_i32 = arith.constant 0 : i32
    %c0_i32_0 = arith.constant 0 : i32
    %c0_i32_1 = arith.constant 0 : i32
    return %c0_i32, %c0_i32_0 : i32, i32
  }
  func.func @transform_2(%arg0: i32) -> (i32, i32) {
    %c0_i32 = arith.constant 0 : i32
    %c0_i32_0 = arith.constant 0 : i32
    %c0_i32_1 = arith.constant 0 : i32
    return %c0_i32, %c0_i32_0 : i32, i32
  }
  func.func @transform_3(%arg0: i32) -> (i32, i32) {
    %c0_i32 = arith.constant 0 : i32
    %c0_i32_0 = arith.constant 0 : i32
    return %c0_i32, %arg0 : i32, i32
  }
  func.func @transform_4(%arg0: i32) -> (i32, i32) {
    %c0_i32 = arith.constant 0 : i32
    %c0_i32_0 = arith.constant 0 : i32
    %c0_i32_1 = arith.constant 0 : i32
    return %c0_i32, %c0_i32_0 : i32, i32
  }
}

module attributes {stable_mosaic.version = 11 : i64} {
  func.func @_stage_kernel(%arg0: i32, %arg1: memref<16x128xbf16, #tpu.memory_space<vmem>>, %arg2: memref<8x16xbf16, #tpu.memory_space<vmem>>, %arg3: memref<8x1xf32, #tpu.memory_space<vmem>>, %arg4: memref<8x128xbf16, #tpu.memory_space<vmem>>, %arg5: memref<8x2xf32, #tpu.memory_space<vmem>>) attributes {dimension_semantics = [#tpu.dimension_semantics<arbitrary>], iteration_bounds = array<i64: 2>, scalar_prefetch = 0 : i64, scratch_operands = 0 : i64, tpu.core_type = #tpu.core_type<tc>, window_params = [{transform_indices = @transform_0, window_bounds = array<i64: 16, 128>}, {pipeline_mode = #tpu.pipeline_mode<synchronous>, transform_indices = @transform_1, window_bounds = array<i64: 8, 16>}, {pipeline_mode = #tpu.pipeline_mode<synchronous>, transform_indices = @transform_2, window_bounds = array<i64: 8, 1>}, {transform_indices = @transform_3, window_bounds = array<i64: 8, 128>}, {pipeline_mode = #tpu.pipeline_mode<synchronous>, transform_indices = @transform_4, window_bounds = array<i64: 8, 2>}]} {
    %c0 = arith.constant 0 : index
    %c0_0 = arith.constant 0 : index
    %0 = vector.load %arg2[%c0, %c0_0] : memref<8x16xbf16, #tpu.memory_space<vmem>>, vector<8x16xbf16>
    %c0_1 = arith.constant 0 : index
    %c0_2 = arith.constant 0 : index
    %1 = vector.load %arg1[%c0_1, %c0_2] : memref<16x128xbf16, #tpu.memory_space<vmem>>, vector<16x128xbf16>
    %cst = arith.constant dense<0.000000e+00> : vector<8x128xf32>
    %2 = tpu.matmul %0, %1, %cst {dimension_numbers = #tpu.dot_dimension_numbers<[1], [0], [0], [1], [0, 0, 1, 1], [], []>} : vector<8x16xbf16>, vector<16x128xbf16>, vector<8x128xf32> -> vector<8x128xf32>
    %c0_3 = arith.constant 0 : index
    %c0_4 = arith.constant 0 : index
    %3 = vector.load %arg3[%c0_3, %c0_4] : memref<8x1xf32, #tpu.memory_space<vmem>>, vector<8x1xf32>
    %4 = vector.broadcast %3 : vector<8x1xf32> to vector<8x128xf32>
    %5 = arith.addf %2, %4 : vector<8x128xf32>
    %cst_5 = arith.constant 0.000000e+00 : f32
    %6 = vector.broadcast %cst_5 : f32 to vector<8x128xf32>
    %7 = arith.maximumf %5, %6 : vector<8x128xf32>
    %8 = arith.truncf %7 : vector<8x128xf32> to vector<8x128xbf16>
    %c0_6 = arith.constant 0 : index
    %c0_7 = arith.constant 0 : index
    %9 = vector.load %arg4[%c0_6, %c0_7] : memref<8x128xbf16, #tpu.memory_space<vmem>>, vector<8x128xbf16>
    tpu.vector_store %arg4[%c0_6, %c0_7], %8 {strides = array<i32>} : memref<8x128xbf16, #tpu.memory_space<vmem>>, vector<8x128xbf16>,
    %c0_i32 = arith.constant 0 : i32
    %10 = arith.cmpi eq, %arg0, %c0_i32 : i32
    %11 = arith.extui %10 : i1 to i32
    %c0_i32_8 = arith.constant 0 : i32
    %12 = arith.cmpi ne, %11, %c0_i32_8 : i32
    scf.if %12 {
      %cst_16 = arith.constant 0.000000e+00 : f32
      %25 = vector.broadcast %cst_16 : f32 to vector<8x2xf32>
      %c0_17 = arith.constant 0 : index
      %c0_18 = arith.constant 0 : index
      %26 = vector.load %arg5[%c0_17, %c0_18] : memref<8x2xf32, #tpu.memory_space<vmem>>, vector<8x2xf32>
      tpu.vector_store %arg5[%c0_17, %c0_18], %25 {strides = array<i32>} : memref<8x2xf32, #tpu.memory_space<vmem>>, vector<8x2xf32>,
    } else {
    }
    %c0_9 = arith.constant 0 : index
    %c0_10 = arith.constant 0 : index
    %13 = vector.load %arg5[%c0_9, %c0_10] : memref<8x2xf32, #tpu.memory_space<vmem>>, vector<8x2xf32>
    %cst_11 = arith.constant dense<0.000000e+00> : vector<8xf32>
    %14 = vector.multi_reduction <add>, %7, %cst_11 [1] : vector<8x128xf32> to vector<8xf32>
    %15 = vector.shape_cast %14 : vector<8xf32> to vector<8x1xf32>
    %16 = arith.mulf %7, %7 : vector<8x128xf32>
    %cst_12 = arith.constant dense<0.000000e+00> : vector<8xf32>
    %17 = vector.multi_reduction <add>, %16, %cst_12 [1] : vector<8x128xf32> to vector<8xf32>
    %18 = vector.shape_cast %17 : vector<8xf32> to vector<8x1xf32>
    %19 = tpu.concatenate %15, %18 in 1 : vector<8x1xf32>, vector<8x1xf32> -> vector<8x2xf32>
    %20 = arith.addf %13, %19 : vector<8x2xf32>
    %c0_13 = arith.constant 0 : index
    %c0_14 = arith.constant 0 : index
    %21 = vector.load %arg5[%c0_13, %c0_14] : memref<8x2xf32, #tpu.memory_space<vmem>>, vector<8x2xf32>
    tpu.vector_store %arg5[%c0_13, %c0_14], %20 {strides = array<i32>} : memref<8x2xf32, #tpu.memory_space<vmem>>, vector<8x2xf32>,
    %c1_i32 = arith.constant 1 : i32
    %22 = arith.cmpi eq, %arg0, %c1_i32 : i32
    %23 = arith.extui %22 : i1 to i32
    %c0_i32_15 = arith.constant 0 : i32
    %24 = arith.cmpi ne, %23, %c0_i32_15 : i32
    scf.if %24 {
      %c0_16 = arith.constant 0 : index
      %c0_17 = arith.constant 0 : index
      %25 = vector.load %arg5[%c0_16, %c0_17] : memref<8x2xf32, #tpu.memory_space<vmem>>, vector<8x2xf32>
      %26 = vector.extract_strided_slice %25 {offsets = [0, 0], sizes = [8, 1], strides = [1, 1]} : vector<8x2xf32> to vector<8x1xf32>
      %cst_18 = arith.constant 3.906250e-03 : f32
      %27 = vector.broadcast %cst_18 : f32 to vector<8x1xf32>
      %28 = arith.mulf %26, %27 : vector<8x1xf32>
      %29 = vector.extract_strided_slice %25 {offsets = [0, 1], sizes = [8, 1], strides = [1, 1]} : vector<8x2xf32> to vector<8x1xf32>
      %cst_19 = arith.constant 3.906250e-03 : f32
      %30 = vector.broadcast %cst_19 : f32 to vector<8x1xf32>
      %31 = arith.mulf %29, %30 : vector<8x1xf32>
      %32 = arith.mulf %28, %28 : vector<8x1xf32>
      %33 = arith.subf %31, %32 : vector<8x1xf32>
      %cst_20 = arith.constant 0.000000e+00 : f32
      %34 = vector.broadcast %cst_20 : f32 to vector<8x1xf32>
      %35 = arith.maximumf %33, %34 : vector<8x1xf32>
      %cst_21 = arith.constant 9.99999974E-6 : f32
      %36 = vector.broadcast %cst_21 : f32 to vector<8x1xf32>
      %37 = arith.addf %35, %36 : vector<8x1xf32>
      %38 = math.rsqrt %37 : vector<8x1xf32>
      %39 = tpu.concatenate %28, %38 in 1 : vector<8x1xf32>, vector<8x1xf32> -> vector<8x2xf32>
      %c0_22 = arith.constant 0 : index
      %c0_23 = arith.constant 0 : index
      %40 = vector.load %arg5[%c0_22, %c0_23] : memref<8x2xf32, #tpu.memory_space<vmem>>, vector<8x2xf32>
      tpu.vector_store %arg5[%c0_22, %c0_23], %39 {strides = array<i32>} : memref<8x2xf32, #tpu.memory_space<vmem>>, vector<8x2xf32>,
    } else {
    }
    return
  }
  func.func @transform_0(%arg0: i32) -> (i32, i32) {
    %c0_i32 = arith.constant 0 : i32
    %c0_i32_0 = arith.constant 0 : i32
    return %c0_i32, %arg0 : i32, i32
  }
  func.func @transform_1(%arg0: i32) -> (i32, i32) {
    %c0_i32 = arith.constant 0 : i32
    %c0_i32_0 = arith.constant 0 : i32
    %c0_i32_1 = arith.constant 0 : i32
    return %c0_i32, %c0_i32_0 : i32, i32
  }
  func.func @transform_2(%arg0: i32) -> (i32, i32) {
    %c0_i32 = arith.constant 0 : i32
    %c0_i32_0 = arith.constant 0 : i32
    %c0_i32_1 = arith.constant 0 : i32
    return %c0_i32, %c0_i32_0 : i32, i32
  }
  func.func @transform_3(%arg0: i32) -> (i32, i32) {
    %c0_i32 = arith.constant 0 : i32
    %c0_i32_0 = arith.constant 0 : i32
    return %c0_i32, %arg0 : i32, i32
  }
  func.func @transform_4(%arg0: i32) -> (i32, i32) {
    %c0_i32 = arith.constant 0 : i32
    %c0_i32_0 = arith.constant 0 : i32
    %c0_i32_1 = arith.constant 0 : i32
    return %c0_i32, %c0_i32_0 : i32, i32
  }
}

module attributes {stable_mosaic.version = 11 : i64} {
  func.func @_stage_kernel(%arg0: i32, %arg1: memref<8x128xbf16, #tpu.memory_space<vmem>>, %arg2: memref<4x8xbf16, #tpu.memory_space<vmem>>, %arg3: memref<4x1xf32, #tpu.memory_space<vmem>>, %arg4: memref<4x128xf32, #tpu.memory_space<vmem>>) attributes {dimension_semantics = [#tpu.dimension_semantics<parallel>], iteration_bounds = array<i64: 2>, scalar_prefetch = 0 : i64, scratch_operands = 0 : i64, tpu.core_type = #tpu.core_type<tc>, window_params = [{transform_indices = @transform_0, window_bounds = array<i64: 8, 128>}, {pipeline_mode = #tpu.pipeline_mode<synchronous>, transform_indices = @transform_1, window_bounds = array<i64: 4, 8>}, {pipeline_mode = #tpu.pipeline_mode<synchronous>, transform_indices = @transform_2, window_bounds = array<i64: 4, 1>}, {transform_indices = @transform_3, window_bounds = array<i64: 4, 128>}]} {
    %c0 = arith.constant 0 : index
    %c0_0 = arith.constant 0 : index
    %0 = vector.load %arg2[%c0, %c0_0] : memref<4x8xbf16, #tpu.memory_space<vmem>>, vector<4x8xbf16>
    %c0_1 = arith.constant 0 : index
    %c0_2 = arith.constant 0 : index
    %1 = vector.load %arg1[%c0_1, %c0_2] : memref<8x128xbf16, #tpu.memory_space<vmem>>, vector<8x128xbf16>
    %cst = arith.constant dense<0.000000e+00> : vector<4x128xf32>
    %2 = tpu.matmul %0, %1, %cst {dimension_numbers = #tpu.dot_dimension_numbers<[1], [0], [0], [1], [0, 0, 1, 1], [], []>} : vector<4x8xbf16>, vector<8x128xbf16>, vector<4x128xf32> -> vector<4x128xf32>
    %c0_3 = arith.constant 0 : index
    %c0_4 = arith.constant 0 : index
    %3 = vector.load %arg3[%c0_3, %c0_4] : memref<4x1xf32, #tpu.memory_space<vmem>>, vector<4x1xf32>
    %4 = vector.broadcast %3 : vector<4x1xf32> to vector<4x128xf32>
    %5 = arith.addf %2, %4 : vector<4x128xf32>
    %cst_5 = arith.constant 0.000000e+00 : f32
    %6 = vector.broadcast %cst_5 : f32 to vector<4x128xf32>
    %7 = arith.subf %6, %5 : vector<4x128xf32>
    %8 = math.exp %7 : vector<4x128xf32>
    %cst_6 = arith.constant 1.000000e+00 : f32
    %9 = vector.broadcast %cst_6 : f32 to vector<4x128xf32>
    %10 = arith.addf %9, %8 : vector<4x128xf32>
    %cst_7 = arith.constant 1.000000e+00 : f32
    %11 = vector.broadcast %cst_7 : f32 to vector<4x128xf32>
    %12 = arith.divf %11, %10 : vector<4x128xf32>
    %c0_8 = arith.constant 0 : index
    %c0_9 = arith.constant 0 : index
    %13 = vector.load %arg4[%c0_8, %c0_9] : memref<4x128xf32, #tpu.memory_space<vmem>>, vector<4x128xf32>
    tpu.vector_store %arg4[%c0_8, %c0_9], %12 {strides = array<i32>} : memref<4x128xf32, #tpu.memory_space<vmem>>, vector<4x128xf32>,
    return
  }
  func.func @transform_0(%arg0: i32) -> (i32, i32) {
    %c0_i32 = arith.constant 0 : i32
    %c0_i32_0 = arith.constant 0 : i32
    return %c0_i32, %arg0 : i32, i32
  }
  func.func @transform_1(%arg0: i32) -> (i32, i32) {
    %c0_i32 = arith.constant 0 : i32
    %c0_i32_0 = arith.constant 0 : i32
    %c0_i32_1 = arith.constant 0 : i32
    return %c0_i32, %c0_i32_0 : i32, i32
  }
  func.func @transform_2(%arg0: i32) -> (i32, i32) {
    %c0_i32 = arith.constant 0 : i32
    %c0_i32_0 = arith.constant 0 : i32
    %c0_i32_1 = arith.constant 0 : i32
    return %c0_i32, %c0_i32_0 : i32, i32
  }
  func.func @transform_3(%arg0: i32) -> (i32, i32) {
    %c0_i32 = arith.constant 0 : i32
    %c0_i32_0 = arith.constant 0 : i32
    return %c0_i32, %arg0 : i32, i32
  }
}

</mosaic_0001>

<bundles_post_ra>
// kernel: net_forward.4
= control target key start
LH: loop header
LB: loop body
LE: loop exit
PB: predicated region body
PF: predicated region fallthrough
CT: control target
= control target key end

     0   :  { %s746_s15 = smov 0   ;;  %s748_s16 = smov 0   ;;  %s936_s0 = inlined_call_operand.vmem [shape: f32[256,16], index: 0, kind: input, shape index: {}]   ;;  %s937_s1 = inlined_call_operand.vmem [shape: bf16[32,16], index: 1, kind: input, shape index: {}]   ;;  %s938_s2 = inlined_call_operand.vmem [shape: f32[32,1], index: 2, kind: input, shape index: {}]   ;;  %s939_s3 = inlined_call_operand.vmem [shape: bf16[32,256], index: 3, kind: output, shape index: {0}]   ;;  %s940_s4 = inlined_call_operand.vmem [shape: f32[32,2], index: 4, kind: output, shape index: {1}]  }
   0x1   :  { %s750_s17 = smov 0  }
   0x2 LB: > { %s759_s18 = sadd.s32 4294967295, %s716_s17   ;;  %s761_s19 = sadd.s32 1, %s716_s17   ;;  %s716_s17 = sphi %s750_s17, %s944_s17   ;;  %s712_s16 = sphi %s748_s16, %s943_s16   ;;  %s708_s15 = sphi %s746_s15, %s942_s15  }
   0x3   : > { %s87_s20 = ssub.s32 %s716_s17, %s761_s19  ;;  %s90_s21 = sadd.s32 1, %s712_s16 }
   0x4   : > { %p88_p0 = scmp.eq.s32.totalorder %s87_s20, 0  ;;  %p100_p1 = scmp.ne.s32.totalorder %s712_s16, %s708_s15 }
   0x5   : > { %p101_p2 = scmp.eq.s32.totalorder %s759_s18, 1  ;;  %p584_p3 = scmp.ge.s32.totalorder %s716_s17, 1 }
   0x6   : > { %s769_s22 = scalar_select %p88_p0, %s712_s16, %s90_s21  }
   0x7   : > { %p771_p4 = por %p101_p2, %p100_p1  ;;  %p161_p5 = scmp.lt.s32.totalorder %s716_s17, 3 }
   0x9   : > { %p162_p6 = pnand %p584_p3, %p161_p5 }
   0xa   : > { %s586_s24 = sshll.u32 (!%p162_p6), %s759_s18, 4  ;;  %s181_s17 = sand.u32 (!%p162_p6), 1, %s708_s15  }
   0xb   : > { %165 = sbr.rel (%p162_p6) target bundleno = 607 (0x25f), region = 32  ;;  %p187_p7 = scmp.lt.s32.totalorder (!%p162_p6), %s586_s24, 31 }
   0xc   : > { %s585_s20 = sshll.u32 (!%p162_p6), %s181_s17, 4  ;;  %p596_p8 = scmp.ne.s32.totalorder (!%p162_p6), %s759_s18, 0 }
   0xd   : > { %s834_s21 = scalar_lea.vmem (!%p162_p6), [#allocation2], %s585_s20 }
  0x10   : > { %v684_v0 = vld [vmem:[%s937_s1] sm:$0xff]   ;;  %vm255_vm0 = vcmask 130048   ;;  %v223_v1 = vld [vmem:[%s938_s2 + $0x10] sm:$0xff]  ;;  %s946_s24 = smov (!%p187_p7, %s586_s24), 31  ;;  %v718_v3 = vmov 0   ;;  %v224_v4 = vld [vmem:[%s938_s2 + $0x18] sm:$0xff] }
  0x11   : > { %v221_v2 = vld [vmem:[%s938_s2] sm:$0xff]  ;;  %643 = vmatprep.mubr.msk.bf16.mxu0 %vm255_vm0, %v684_v0  ;;  %683 = vset.pattern.permute.xlu1 %v718_v3  ;;  %s587_s5 = sshll.u32 %s946_s24, 3  ;;  %v222_v5 = vld [vmem:[%s938_s2 + $0x8] sm:$0xff] }
  0x12   : > { %682 = vset.pattern.permute.xlu0 %v718_v3  ;;  %237 = vperm.xlu1 %683, %v223_v1   ;;  %s792_s10 = scalar_lea.vmem %s936_s0, %s587_s5  ;;  %v685_v38 = vld [vmem:[%s937_s1 + $0x8] sm:$0xff]  }
  0x13   : > { %227 = vperm.xlu0 %682, %v221_v2   ;;  %v211_v6 = vld [vmem:[%s792_s10 + $0x70] sm:$0xff]  ;;  %v212_v7 = vld [vmem:[%s792_s10 + $0x78] sm:$0xff]  ;;  %v209_v8 = vld [vmem:[%s792_s10 + $0x60] sm:$0xff] }
  0x14   : > { %v220_v9 = vpack.c.bf16 %v212_v7, %v211_v6  ;;  %v210_v10 = vld [vmem:[%s792_s10 + $0x68] sm:$0xff]  ;;  %v207_v13 = vld [vmem:[%s792_s10 + $0x50] sm:$0xff]  ;;  %v208_v14 = vld [vmem:[%s792_s10 + $0x58] sm:$0xff] }
  0x15   : > { %v219_v11 = vpack.c.bf16 %v210_v10, %v209_v8  ;;  %v218_v16 = vpack.c.bf16 %v208_v14, %v207_v13  ;;  %v205_v17 = vld [vmem:[%s792_s10 + $0x40] sm:$0xff]  ;;  %v206_v18 = vld [vmem:[%s792_s10 + $0x48] sm:$0xff]  ;;  %v203_v21 = vld [vmem:[%s792_s10 + $0x30] sm:$0xff] }
  0x16   : > { %242 = vperm.xlu1 %683, %v224_v4   ;;  %647 = vmatprep.subr.msk.bf16.mxu0 %vm255_vm0, %v220_v9  ;;  %v284_v12 = vsel %vm255_vm0, %v220_v9, 0  ;;  %v217_v20 = vpack.c.bf16 %v206_v18, %v205_v17  ;;  %v204_v22 = vld [vmem:[%s792_s10 + $0x38] sm:$0xff]  ;;  %v201_v25 = vld [vmem:[%s792_s10 + $0x20] sm:$0xff]  ;;  %v202_v26 = vld [vmem:[%s792_s10 + $0x28] sm:$0xff] }
  0x17   : > { %232 = vperm.xlu0 %682, %v222_v5   ;;  %628 = vmatpush3.bf16.xpose.msra.mxu0 %v284_v12  ;;  %v281_v15 = vsel %vm255_vm0, %v219_v11, 0  ;;  %v278_v19 = vsel %vm255_vm0, %v218_v16, 0  ;;  %v216_v24 = vpack.c.bf16 %v204_v22, %v203_v21  ;;  %v215_v28 = vpack.c.bf16 %v202_v26, %v201_v25  ;;  %v199_v29 = vld [vmem:[%s792_s10 + $0x10] sm:$0xff]  ;;  %v200_v30 = vld [vmem:[%s792_s10 + $0x18] sm:$0xff]  ;;  %v197_v33 = vld [vmem:[%s792_s10] sm:$0xff] }
  0x18   : > { %648 = vmatprep.subr.msk.bf16.mxu0 %vm255_vm0, %v219_v11  ;;  %v275_v23 = vsel %vm255_vm0, %v217_v20, 0  ;;  %v214_v32 = vpack.c.bf16 %v200_v30, %v199_v29  ;;  %v198_v34 = vld [vmem:[%s792_s10 + $0x8] sm:$0xff] }
  0x19   : > { %v272_v27 = vsel %vm255_vm0, %v216_v24, 0  ;;  %v269_v31 = vsel %vm255_vm0, %v215_v28, 0  ;;  %v213_v36 = vpack.c.bf16 %v198_v34, %v197_v33 }
  0x1a   : > { %v266_v35 = vsel %vm255_vm0, %v214_v32, 0 }
  0x1b   : > { %v263_v37 = vsel %vm255_vm0, %v213_v36, 0 }
  0x1f   : > { %630 = vmatpush3.bf16.xpose.msra.mxu0 %v281_v15 }
  0x20   : > { %649 = vmatprep.subr.msk.bf16.mxu0 %vm255_vm0, %v218_v16 }
  0x27   : > { %632 = vmatpush3.bf16.xpose.msra.mxu0 %v278_v19 }
  0x28   : > { %650 = vmatprep.subr.msk.bf16.mxu0 %vm255_vm0, %v217_v20 }
  0x2f   : > { %634 = vmatpush3.bf16.xpose.msra.mxu0 %v275_v23 }
  0x30   : > { %651 = vmatprep.subr.msk.bf16.mxu0 %vm255_vm0, %v216_v24 }
  0x37   : > { %636 = vmatpush3.bf16.xpose.msra.mxu0 %v272_v27 }
  0x38   : > { %652 = vmatprep.subr.msk.bf16.mxu0 %vm255_vm0, %v215_v28 }
  0x3f   : > { %638 = vmatpush3.bf16.xpose.msra.mxu0 %v269_v31 }
  0x40   : > { %653 = vmatprep.subr.msk.bf16.mxu0 %vm255_vm0, %v214_v32 }
  0x47   : > { %640 = vmatpush3.bf16.xpose.msra.mxu0 %v266_v35 }
  0x48   : > { %654 = vmatprep.subr.msk.bf16.mxu0 %vm255_vm0, %v213_v36 }
  0x4f   : > { %642 = vmatpush3.bf16.xpose.msra.mxu0 %v263_v37 }
  0x56   : > { %644 = vmatmul.mubr.msk.bf16.vlgmr.msra.gmra.mxu0 %vm255_vm0, %v685_v38 }
  0x8d   : > { %v238_v39 = vpop.permute.xlu1 %237 }
  0x8e   : > { %v228_v40 = vpop.permute.xlu0 %227 }
  0x91   : > { %v243_v44 = vpop.permute.xlu1 %242 }
  0x92   : > { %v233_v48 = vpop.permute.xlu0 %232 }
 0x116   : > { %v645_v41 = vpop.f32.mrf.mxu0 }
 0x117   : > { %v329_v43 = vadd.f32 %v645_v41, %v238_v39 }
 0x118   : > { %v320_v42 = vpop.f32.mrf.mxu0 }
 0x119   : > { %v321_v46 = vadd.f32 %v320_v42, %v228_v40  ;;  %v337_v50 = vmax.f32 %v329_v43, 0.0 }
 0x11a   : > { %v646_v45 = vpop.f32.mrf.mxu0 }
 0x11b   : > { %v332_v47 = vadd.f32 %v646_v45, %v243_v44  ;;  %v335_v53 = vmax.f32 %v321_v46, 0.0 }
 0x11c   : > { %v323_v49 = vpop.f32.mrf.mxu0 }
 0x11d   : > { %v338_v51 = vmax.f32 %v332_v47, 0.0  ;;  %v324_v52 = vadd.f32 %v323_v49, %v233_v48 }
 0x11f   : > { %v614_v54 = vpack.c.bf16 %v338_v51, %v337_v50  ;;  %v336_v55 = vmax.f32 %v324_v52, 0.0  ;;  %362 = sbr.rel (%p596_p8) target bundleno = 295 (0x127), region = 36 }
 0x121   : > { %616 = vst [vmem:[%s834_s21 + $0x8] sm:$0xff] %v614_v54   ;;  %v609_v56 = vpack.c.bf16 %v336_v55, %v335_v53 }
 0x123   : > { %610 = vst [vmem:[%s834_s21] sm:$0xff] %v609_v56  }
 0x124   : > { %vm363_vm1 = vcmask 15360   ;;  %v719_v57 = vmov 0.0  }
 0x125   : > { %364 = vst.msk [vmem:[%s940_s4] sm:$0xff] %vm363_vm1, %v719_v57  ;;  %365 = vst.msk [vmem:[%s940_s4 + $0x8] sm:$0xff] %vm363_vm1, %v719_v57 }
 0x126   : > { %366 = vst.msk [vmem:[%s940_s4 + $0x10] sm:$0xff] %vm363_vm1, %v719_v57  ;;  %367 = vst.msk [vmem:[%s940_s4 + $0x18] sm:$0xff] %vm363_vm1, %v719_v57 }
 0x127 PF: > { %376 = vadd.xlane.f32.xlu1 %v337_v50  ;;  %372 = vadd.xlane.f32.xlu0 %v335_v53  ;;  %v381_v58 = vmul.f32 %v336_v55, %v336_v55  ;;  %v380_v59 = vmul.f32 %v335_v53, %v335_v53  ;;  %v383_v60 = vmul.f32 %v338_v51, %v338_v51  ;;  %vm392_vm2 = vcmask 7168   ;;  %p597_p9 = scmp.ne.s32.totalorder %s759_s18, 1 }
 0x128   : > { %v382_v61 = vmul.f32 %v337_v50, %v337_v50  ;;  %vm401_vm3 = vcmask 15360   ;;  %s720_s9 = smov (!%p597_p9), 1  }
 0x12b   : > { %378 = vadd.xlane.f32.xlu1 %v338_v51  ;;  %374 = vadd.xlane.f32.xlu0 %v336_v55 }
 0x12c   : > { %v369_v2 = vld [vmem:[%s940_s4 + $0x8] sm:$0xff]  ;;  %v368_v3 = vld [vmem:[%s940_s4] sm:$0xff] }
 0x12d   : > { %v371_v10 = vld [vmem:[%s940_s4 + $0x18] sm:$0xff]  ;;  %v370_v11 = vld [vmem:[%s940_s4 + $0x10] sm:$0xff] }
 0x12f   : > { %386 = vadd.xlane.f32.xlu1 %v381_v58  ;;  %384 = vadd.xlane.f32.xlu0 %v380_v59 }
 0x133   : > { %390 = vadd.xlane.f32.xlu1 %v383_v60  ;;  %388 = vadd.xlane.f32.xlu0 %v382_v61 }
 0x1b0   : > { %v377_v62 = vpop.xlane.xlu1 %376  ;;  %v373_v63 = vpop.xlane.xlu0 %372 }
 0x1b4   : > { %v379_v0 = vpop.xlane.xlu1 %378  ;;  %v375_v1 = vpop.xlane.xlu0 %374 }
 0x1b8   : > { %v387_v4 = vpop.xlane.xlu1 %386  ;;  %v385_v5 = vpop.xlane.xlu0 %384 }
 0x1b9   : > { %v394_v6 = vsel %vm392_vm2, %v375_v1, %v387_v4  ;;  %v393_v7 = vsel %vm392_vm2, %v373_v63, %v385_v5 }
 0x1ba   : > { %v398_v8 = vadd.f32 %v394_v6, %v369_v2  ;;  %v397_v9 = vadd.f32 %v393_v7, %v368_v3 }
 0x1bc   : > { %403 = vst.msk [vmem:[%s940_s4 + $0x8] sm:$0xff] %vm401_vm3, %v398_v8  ;;  %402 = vst.msk [vmem:[%s940_s4] sm:$0xff] %vm401_vm3, %v397_v9  ;;  %v391_v12 = vpop.xlane.xlu1 %390  ;;  %v389_v13 = vpop.xlane.xlu0 %388  ;;  %409 = sbr.rel (%p597_p9) target bundleno = 602 (0x25a), region = 40 }
 0x1bd   : > { %v396_v14 = vsel %vm392_vm2, %v379_v0, %v391_v12  ;;  %v395_v15 = vsel %vm392_vm2, %v377_v62, %v389_v13 }
 0x1be   : > { %v400_v16 = vadd.f32 %v396_v14, %v371_v10  ;;  %v399_v17 = vadd.f32 %v395_v15, %v370_v11 }
 0x1c0   : > { %405 = vst.msk [vmem:[%s940_s4 + $0x18] sm:$0xff] %vm401_vm3, %v400_v16  ;;  %404 = vst.msk [vmem:[%s940_s4 + $0x10] sm:$0xff] %vm401_vm3, %v399_v17 }
 0x1c3   : > { %v410_v19 = vld [vmem:[%s940_s4] sm:$0xff]  ;;  %v411_v24 = vld [vmem:[%s940_s4 + $0x8] sm:$0xff] }
 0x1c4   : > { %v414_v22 = vmul.f32 0.00390625, %v410_v19  ;;  %v415_v25 = vmul.f32 0.00390625, %v411_v24 }
 0x1c6   : > { %v418_v27 = vmul.f32 %v414_v22, %v414_v22  ;;  %v419_v29 = vmul.f32 %v415_v25, %v415_v25 }
 0x1c7   : > { %v412_v18 = vld [vmem:[%s940_s4 + $0x10] sm:$0xff]  ;;  %v413_v20 = vld [vmem:[%s940_s4 + $0x18] sm:$0xff] }
 0x1c8   : > { %v416_v21 = vmul.f32 0.00390625, %v412_v18  ;;  %v417_v23 = vmul.f32 0.00390625, %v413_v20  ;;  %426 = vrot.lane.b32.xlu0 %v418_v27, %s720_s9 }
 0x1ca   : > { %v420_v26 = vmul.f32 %v416_v21, %v416_v21  ;;  %v421_v28 = vmul.f32 %v417_v23, %v417_v23 }
 0x1cc   : > { %430 = vrot.lane.b32.xlu1 %v420_v26, %s720_s9  ;;  %428 = vrot.lane.b32.xlu0 %v419_v29, %s720_s9 }
 0x1d0   : > { %432 = vrot.lane.b32.xlu1 %v421_v28, %s720_s9 }
 0x23a   : > { %v427_v31 = vpop.permute.xlu0 %426 }
 0x23b   : > { %v438_v33 = vsub.f32 %v414_v22, %v427_v31 }
 0x23d   : > { %v442_v35 = vmax.f32 %v438_v33, 0.0 }
 0x23e   : > { %v431_v30 = vpop.permute.xlu1 %430  ;;  %v429_v37 = vpop.permute.xlu0 %428 }
 0x23f   : > { %v440_v32 = vsub.f32 %v416_v21, %v431_v30  ;;  %v446_v39 = vadd.f32 1e-05, %v442_v35  ;;  %v439_v41 = vsub.f32 %v415_v25, %v429_v37 }
 0x241   : > { %v444_v34 = vmax.f32 %v440_v32, 0.0  ;;  %v443_v43 = vmax.f32 %v439_v41, 0.0 }
 0x242   : > { %v433_v36 = vpop.permute.xlu1 %432 }
 0x243   : > { %v448_v38 = vadd.f32 1e-05, %v444_v34  ;;  %v441_v40 = vsub.f32 %v417_v23, %v433_v36  ;;  %v447_v45 = vadd.f32 1e-05, %v443_v43 }
 0x245   : > { %686 = vrsqrt.f32 %v448_v38  ;;  %v445_v42 = vmax.f32 %v441_v40, 0.0 }
 0x246   : > { %688 = vrsqrt.f32 %v446_v39 }
 0x247   : > { %v449_v44 = vadd.f32 1e-05, %v445_v42 }
 0x249   : > { %690 = vrsqrt.f32 %v449_v44 }
 0x24a   : > { %692 = vrsqrt.f32 %v447_v45 }
 0x252   : > { %v687_v46 = vpop.eup %686 }
 0x253   : > { %v689_v47 = vpop.eup %688  ;;  %v456_v48 = vsel %vm392_vm2, %v416_v21, %v687_v46 }
 0x254   : > { %460 = vst.msk [vmem:[%s940_s4 + $0x10] sm:$0xff] %vm401_vm3, %v456_v48  ;;  %v454_v49 = vsel %vm392_vm2, %v414_v22, %v689_v47 }
 0x255   : > { %458 = vst.msk [vmem:[%s940_s4] sm:$0xff] %vm401_vm3, %v454_v49 }
 0x256   : > { %v691_v50 = vpop.eup %690 }
 0x257   : > { %v693_v51 = vpop.eup %692  ;;  %v457_v52 = vsel %vm392_vm2, %v417_v23, %v691_v50 }
 0x258   : > { %461 = vst.msk [vmem:[%s940_s4 + $0x18] sm:$0xff] %vm401_vm3, %v457_v52  ;;  %v455_v53 = vsel %vm392_vm2, %v415_v25, %v693_v51 }
 0x259   : > { %459 = vst.msk [vmem:[%s940_s4 + $0x8] sm:$0xff] %vm401_vm3, %v455_v53 }
 0x25a PF: > { %468 = sbr.rel (!%p771_p4) target bundleno = 607 (0x25f), region = 44  ;;  %s599_s24 = sshll.u32 (%p771_p4), %s759_s18, 2  ;;  %v487_v54 = vld [vmem:[%s834_s21] sm:$0xf] (%p771_p4)  ;;  %v489_v55 = vld [vmem:[%s834_s21 + $0x4] sm:$0xf] (%p771_p4) }
 0x25b   : > { %s470_s27 = scalar_lea.vmem (%p771_p4), %s939_s3, %s599_s24  ;;  %v491_v56 = vld [vmem:[%s834_s21 + $0x8] sm:$0xf] (%p771_p4)  ;;  %v493_v57 = vld [vmem:[%s834_s21 + $0xc] sm:$0xf] (%p771_p4) }
 0x25c   : > { %488 = vst [vmem:[%s470_s27] sm:$0xf] (%p771_p4), %v487_v54  ;;  %490 = vst [vmem:[%s470_s27 + $0x8] sm:$0xf] (%p771_p4), %v489_v55 }
 0x25d   : > { %492 = vst [vmem:[%s470_s27 + $0x10] sm:$0xf] (%p771_p4), %v491_v56  ;;  %494 = vst [vmem:[%s470_s27 + $0x18] sm:$0xf] (%p771_p4), %v493_v57 }
 0x25f PF: > { %p12_p10 = scmp.ge.s32.totalorder %s761_s19, 4   ;;  %s942_s15 = smov %s712_s16 }
 0x260   : > { %s943_s16 = smov %s769_s22  ;;  %s944_s17 = smov %s761_s19 }
 0x261   :  { %14 = sbr.rel (!%p12_p10) target bundleno = 2 (0x2), region = 119 }

// kernel: net_forward.5
= control target key start
LH: loop header
LB: loop body
LE: loop exit
PB: predicated region body
PF: predicated region fallthrough
CT: control target
= control target key end

     0   :  { %s641_s15 = smov 0   ;;  %s643_s16 = smov 0   ;;  %s755_s0 = inlined_call_operand.vmem [shape: bf16[32,256], index: 0, kind: input, shape index: {}]   ;;  %s756_s1 = inlined_call_operand.vmem [shape: bf16[16,32], index: 1, kind: input, shape index: {}]   ;;  %s757_s2 = inlined_call_operand.vmem [shape: f32[16,1], index: 2, kind: input, shape index: {}]   ;;  %s758_s3 = inlined_call_operand.vmem [shape: bf16[16,256], index: 3, kind: output, shape index: {0}]   ;;  %s759_s4 = inlined_call_operand.vmem [shape: f32[16,2], index: 4, kind: output, shape index: {1}]  }
   0x1   :  { %s645_s17 = smov 0  }
   0x2 LB: > { %s657_s18 = sadd.s32 4294967295, %s609_s17   ;;  %s660_s19 = sadd.s32 1, %s609_s17   ;;  %s609_s17 = sphi %s645_s17, %s763_s17   ;;  %s605_s16 = sphi %s643_s16, %s762_s16   ;;  %s601_s15 = sphi %s641_s15, %s761_s15  }
   0x3   : > { %s19_s20 = ssub.s32 %s609_s17, %s660_s19  ;;  %s22_s21 = sadd.s32 1, %s605_s16 }
   0x4   : > { %p20_p0 = scmp.eq.s32.totalorder %s19_s20, 0  ;;  %p29_p1 = scmp.ne.s32.totalorder %s605_s16, %s601_s15 }
   0x5   : > { %p30_p2 = scmp.eq.s32.totalorder %s609_s17, 0  ;;  %p101_p3 = scmp.eq.s32.totalorder %s657_s18, 1 }
   0x6   : > { %s670_s22 = scalar_select %p20_p0, %s605_s16, %s22_s21  }
   0x7   : > { %p31_p4 = por %p30_p2, %p29_p1  ;;  %p672_p5 = por %p101_p3, %p29_p1 }
   0x8   : > { %p514_p6 = scmp.ge.s32.totalorder %s609_s17, 2 }
   0xa   : > { %150 = sbr.rel (%p514_p6) target bundleno = 21 (0x15), region = 24 }
   0xf   : > { %153 = sbr.rel (!%p31_p4) target bundleno = 21 (0x15), region = 28  ;;  %s155_s24 = sand.u32 (%p31_p4), 1, %s605_s16  }
  0x10   : > { %s516_s25 = sshll.u32 (%p31_p4), %s609_s17, 2  ;;  %s515_s26 = sshll.u32 (%p31_p4), %s155_s24, 4 }
  0x11   : > { %s159_s29 = scalar_lea.vmem (%p31_p4), %s755_s0, %s516_s25  ;;  %s157_s30 = scalar_lea.vmem (%p31_p4), [#allocation2], %s515_s26 }
  0x12   : > { %v176_v0 = vld [vmem:[%s159_s29] sm:$0xf] (%p31_p4)  ;;  %v178_v1 = vld [vmem:[%s159_s29 + $0x8] sm:$0xf] (%p31_p4)  ;;  %v180_v2 = vld [vmem:[%s159_s29 + $0x10] sm:$0xf] (%p31_p4) }
  0x13   : > { %177 = vst [vmem:[%s157_s30] sm:$0xf] (%p31_p4), %v176_v0  ;;  %179 = vst [vmem:[%s157_s30 + $0x4] sm:$0xf] (%p31_p4), %v178_v1  ;;  %v182_v3 = vld [vmem:[%s159_s29 + $0x18] sm:$0xf] (%p31_p4) }
  0x14   : > { %181 = vst [vmem:[%s157_s30 + $0x8] sm:$0xf] %v180_v2  ;;  %183 = vst [vmem:[%s157_s30 + $0xc] sm:$0xf] %v182_v3 }
  0x15 PF: > { %p517_p7 = scmp.ge.s32.totalorder %s609_s17, 1  ;;  %p214_p8 = scmp.lt.s32.totalorder %s609_s17, 3 }
  0x17   : > { %p215_p9 = pnand %p517_p7, %p214_p8 }
  0x18   : > { %s221_s5 = sand.u32 (!%p215_p9), 1, %s601_s15   ;;  %p526_p10 = scmp.ne.s32.totalorder (!%p215_p9), %s657_s18, 0 }
  0x19   : > { %218 = sbr.rel (%p215_p9) target bundleno = 546 (0x222), region = 69  ;;  %s518_s6 = sshll.u32 (!%p215_p9), %s221_s5, 4 }
  0x1a   : > { %s223_s9 = scalar_lea.vmem (!%p215_p9), [#allocation2], %s518_s6  ;;  %s519_s14 = sshll.u32 (!%p215_p9), %s221_s5, 3 }
  0x1b   : > { %s694_s15 = scalar_lea.vmem (!%p215_p9), [#allocation3], %s519_s14 }
  0x1e   : > { %v611_v4 = vmov 0.0   ;;  %vm612_vm0 = vmmov 0   ;;  %v252_v5 = vld [vmem:[%s757_s2] sm:$0xff]  ;;  %v613_v6 = vmov 0   ;;  %v580_v7 = vld [vmem:[%s223_s9 + $0x8] sm:$0xff]   ;;  %vm281_vm1 = vcmask 261120  }
  0x1f   : > { %542 = vmatprep.subr.bf16.mxu0 %v611_v4  ;;  %546 = vmatprep.mubr.msk.bf16.mxu0 %vm612_vm0, %v611_v4  ;;  %v253_v8 = vld [vmem:[%s757_s2 + $0x8] sm:$0xff]  ;;  %v581_v9 = vld [vmem:[%s223_s9] sm:$0xff]  }
  0x20   : > { %579 = vset.pattern.permute.xlu0 %v613_v6  ;;  %543 = vmatpush3.bf16.msra.mxu0 %v580_v7  ;;  %v582_v10 = vld [vmem:[%s756_s1] sm:$0xff]  }
  0x21   : > { %256 = vperm.xlu0 %579, %v252_v5   ;;  %544 = vmatprep.subr.bf16.mxu0 %v611_v4 }
  0x24   : > { %545 = vmatpush3.bf16.msra.mxu0 %v581_v9 }
  0x25   : > { %261 = vperm.xlu0 %579, %v253_v8  }
  0x27   : > { %547 = vmatmul.mubr.msk.bf16.vlgmr.msra.gmra.mxu0 %vm281_vm1, %v582_v10 }
  0x9c   : > { %v257_v11 = vpop.permute.xlu0 %256 }
  0xa0   : > { %v262_v15 = vpop.permute.xlu0 %261 }
  0xe7   : > { %v319_v12 = vpop.f32.mrf.mxu0 }
  0xe8   : > { %v320_v14 = vadd.f32 %v319_v12, %v257_v11 }
  0xe9   : > { %v548_v13 = vpop.f32.mrf.mxu0 }
  0xea   : > { %v326_v19 = vmax.f32 %v320_v14, 0.0 }
  0xeb   : > { %v322_v16 = vpop.f32.mrf.mxu0 }
  0xec   : > { %v323_v17 = vadd.f32 %v322_v16, %v262_v15 }
  0xed   : > { %v549_v18 = vpop.f32.mrf.mxu0 }
  0xee   : > { %v327_v20 = vmax.f32 %v323_v17, 0.0  ;;  %341 = sbr.rel (%p526_p10) target bundleno = 245 (0xf5), region = 77 }
  0xf0   : > { %v537_v21 = vpack.c.bf16 %v327_v20, %v326_v19 }
  0xf2   : > { %538 = vst [vmem:[%s694_s15] sm:$0xff] %v537_v21  }
  0xf3   : > { %vm342_vm2 = vcmask 15360   ;;  %v614_v22 = vmov 0.0  }
  0xf4   : > { %343 = vst.msk [vmem:[%s759_s4] sm:$0xff] %vm342_vm2, %v614_v22  ;;  %344 = vst.msk [vmem:[%s759_s4 + $0x8] sm:$0xff] %vm342_vm2, %v614_v22 }
  0xf5 PF: > { %347 = vadd.xlane.f32.xlu0 %v326_v19  ;;  %v351_v23 = vmul.f32 %v326_v19, %v326_v19  ;;  %v352_v24 = vmul.f32 %v327_v20, %v327_v20  ;;  %vm357_vm3 = vcmask 7168   ;;  %vm362_vm4 = vcmask 15360   ;;  %p527_p11 = scmp.ne.s32.totalorder %s657_s18, 1 }
  0xf6   : > { %s615_s11 = smov (!%p527_p11), 1  }
  0xf7   : > { %353 = vadd.xlane.f32.xlu1 %v351_v23 }
  0xf9   : > { %349 = vadd.xlane.f32.xlu0 %v327_v20 }
  0xfb   : > { %355 = vadd.xlane.f32.xlu1 %v352_v24  ;;  %v345_v26 = vld [vmem:[%s759_s4] sm:$0xff]  ;;  %v346_v31 = vld [vmem:[%s759_s4 + $0x8] sm:$0xff] }
 0x17e   : > { %v348_v25 = vpop.xlane.xlu0 %347 }
 0x180   : > { %v354_v27 = vpop.xlane.xlu1 %353 }
 0x181   : > { %v358_v28 = vsel %vm357_vm3, %v348_v25, %v354_v27 }
 0x182   : > { %v360_v29 = vadd.f32 %v358_v28, %v345_v26  ;;  %v350_v30 = vpop.xlane.xlu0 %349 }
 0x184   : > { %363 = vst.msk [vmem:[%s759_s4] sm:$0xff] %vm362_vm4, %v360_v29  ;;  %v356_v32 = vpop.xlane.xlu1 %355  ;;  %368 = sbr.rel (%p527_p11) target bundleno = 541 (0x21d), region = 81 }
 0x185   : > { %v359_v33 = vsel %vm357_vm3, %v350_v30, %v356_v32 }
 0x186   : > { %v361_v34 = vadd.f32 %v359_v33, %v346_v31 }
 0x188   : > { %364 = vst.msk [vmem:[%s759_s4 + $0x8] sm:$0xff] %vm362_vm4, %v361_v34 }
 0x18b   : > { %v369_v35 = vld [vmem:[%s759_s4] sm:$0xff] }
 0x18c   : > { %v371_v37 = vmul.f32 0.00390625, %v369_v35 }
 0x18e   : > { %v373_v39 = vmul.f32 %v371_v37, %v371_v37 }
 0x18f   : > { %v370_v36 = vld [vmem:[%s759_s4 + $0x8] sm:$0xff] }
 0x190   : > { %v372_v38 = vmul.f32 0.00390625, %v370_v36  ;;  %377 = vrot.lane.b32.xlu0 %v373_v39, %s615_s11 }
 0x192   : > { %v374_v40 = vmul.f32 %v372_v38, %v372_v38 }
 0x194   : > { %379 = vrot.lane.b32.xlu0 %v374_v40, %s615_s11 }
 0x202   : > { %v378_v41 = vpop.permute.xlu0 %377 }
 0x203   : > { %v383_v42 = vsub.f32 %v371_v37, %v378_v41 }
 0x205   : > { %v385_v43 = vmax.f32 %v383_v42, 0.0 }
 0x206   : > { %v380_v44 = vpop.permute.xlu0 %379 }
 0x207   : > { %v387_v45 = vadd.f32 1e-05, %v385_v43  ;;  %v384_v46 = vsub.f32 %v372_v38, %v380_v44 }
 0x209   : > { %583 = vrsqrt.f32 %v387_v45  ;;  %v386_v47 = vmax.f32 %v384_v46, 0.0 }
 0x20b   : > { %v388_v48 = vadd.f32 1e-05, %v386_v47 }
 0x20d   : > { %585 = vrsqrt.f32 %v388_v48 }
 0x216   : > { %v584_v49 = vpop.eup %583 }
 0x217   : > { %v391_v50 = vsel %vm357_vm3, %v371_v37, %v584_v49 }
 0x218   : > { %393 = vst.msk [vmem:[%s759_s4] sm:$0xff] %vm362_vm4, %v391_v50 }
 0x21a   : > { %v586_v51 = vpop.eup %585 }
 0x21b   : > { %v392_v52 = vsel %vm357_vm3, %v372_v38, %v586_v51 }
 0x21c   : > { %394 = vst.msk [vmem:[%s759_s4 + $0x8] sm:$0xff] %vm362_vm4, %v392_v52 }
 0x21d PF: > { %401 = sbr.rel (!%p672_p5) target bundleno = 546 (0x222), region = 85  ;;  %s529_s20 = sshll.u32 (%p672_p5), %s657_s18, 2  ;;  %v420_v53 = vld [vmem:[%s694_s15] sm:$0xf] (%p672_p5)  ;;  %v422_v54 = vld [vmem:[%s694_s15 + $0x4] sm:$0xf] (%p672_p5) }
 0x21e   : > { %s403_s25 = scalar_lea.vmem (%p672_p5), %s758_s3, %s529_s20 }
 0x21f   : > { %421 = vst [vmem:[%s403_s25] sm:$0xf] (%p672_p5), %v420_v53  ;;  %423 = vst [vmem:[%s403_s25 + $0x8] sm:$0xf] (%p672_p5), %v422_v54 }
 0x222 PF: > { %p12_p12 = scmp.ge.s32.totalorder %s660_s19, 4   ;;  %s761_s15 = smov %s605_s16 }
 0x223   : > { %s762_s16 = smov %s670_s22  ;;  %s763_s17 = smov %s660_s19 }
 0x224   :  { %14 = sbr.rel (!%p12_p12) target bundleno = 2 (0x2), region = 165 }

// kernel: net_forward.6
= control target key start
LH: loop header
LB: loop body
LE: loop exit
PB: predicated region body
PF: predicated region fallthrough
CT: control target
= control target key end

     0   :  { %s513_s15 = smov 0   ;;  %s515_s16 = smov 0   ;;  %s584_s0 = inlined_call_operand.vmem [shape: bf16[16,256], index: 0, kind: input, shape index: {}]   ;;  %s585_s1 = inlined_call_operand.vmem [shape: bf16[8,16], index: 1, kind: input, shape index: {}]   ;;  %s586_s2 = inlined_call_operand.vmem [shape: f32[8,1], index: 2, kind: input, shape index: {}]   ;;  %s587_s3 = inlined_call_operand.vmem [shape: bf16[8,256], index: 3, kind: output, shape index: {0}]   ;;  %s588_s4 = inlined_call_operand.vmem [shape: f32[8,2], index: 4, kind: output, shape index: {1}]  }
   0x1   :  { %s517_s17 = smov 0  }
   0x2 LB: > { %s526_s18 = sadd.s32 4294967295, %s481_s17   ;;  %s528_s19 = sadd.s32 1, %s481_s17   ;;  %s481_s17 = sphi %s517_s17, %s591_s17   ;;  %s477_s16 = sphi %s515_s16, %s590_s16   ;;  %s473_s15 = sphi %s513_s15, %s589_s15  }
   0x3   : > { %s19_s20 = ssub.s32 %s481_s17, %s528_s19  ;;  %s22_s21 = sadd.s32 1, %s477_s16 }
   0x4   : > { %p20_p0 = scmp.eq.s32.totalorder %s19_s20, 0  ;;  %p29_p1 = scmp.ne.s32.totalorder %s477_s16, %s473_s15 }
   0x5   : > { %p30_p2 = scmp.eq.s32.totalorder %s481_s17, 0  ;;  %p406_p4 = scmp.ge.s32.totalorder %s481_s17, 2 }
   0x6   : > { %s535_s22 = scalar_select %p20_p0, %s477_s16, %s22_s21  }
   0x7   : > { %p31_p3 = por %p30_p2, %p29_p1  ;;  %150 = sbr.rel (%p406_p4) target bundleno = 17 (0x11), region = 24 }
   0xc   : > { %153 = sbr.rel (!%p31_p3) target bundleno = 17 (0x11), region = 28  ;;  %s155_s23 = sand.u32 (%p31_p3), 1, %s477_s16  }
   0xd   : > { %s408_s24 = sshll.u32 (%p31_p3), %s481_s17, 2  ;;  %s407_s25 = sshll.u32 (%p31_p3), %s155_s23, 3 }
   0xe   : > { %s159_s28 = scalar_lea.vmem (%p31_p3), %s584_s0, %s408_s24  ;;  %s157_s29 = scalar_lea.vmem (%p31_p3), [#allocation2], %s407_s25 }
   0xf   : > { %v176_v0 = vld [vmem:[%s159_s28] sm:$0xf] (%p31_p3)  ;;  %v178_v1 = vld [vmem:[%s159_s28 + $0x8] sm:$0xf] (%p31_p3) }
  0x10   : > { %177 = vst [vmem:[%s157_s29] sm:$0xf] (%p31_p3), %v176_v0  ;;  %179 = vst [vmem:[%s157_s29 + $0x4] sm:$0xf] (%p31_p3), %v178_v1 }
  0x11 PF: > { %p409_p5 = scmp.ge.s32.totalorder %s481_s17, 1  ;;  %p206_p6 = scmp.lt.s32.totalorder %s481_s17, 3 }
  0x13   : > { %p207_p7 = pnand %p409_p5, %p206_p6 }
  0x14   : > { %s213_s30 = sand.u32 (!%p207_p7), 1, %s473_s15   ;;  %p237_p8 = scmp.lt.s32.totalorder (!%p207_p7), %s526_s18, 1 }
  0x15   : > { %210 = sbr.rel (%p207_p7) target bundleno = 527 (0x20f), region = 69  ;;  %s410_s5 = sshll.u32 (!%p207_p7), %s213_s30, 3 }
  0x16   : > { %s215_s8 = scalar_lea.vmem (!%p207_p7), [#allocation2], %s410_s5  ;;  %p414_p9 = scmp.ne.s32.totalorder (!%p207_p7), %s526_s18, 0 }
  0x1a   : > { %v483_v2 = vmov 0.0   ;;  %vm484_vm0 = vmmov 0   ;;  %v245_v3 = vld [vmem:[%s586_s2] sm:$0xff]  ;;  %v485_v4 = vmov 0   ;;  %vm257_vm1 = vcmask 130048   ;;  %s238_s11 = scalar_select %p237_p8, %s526_s18, 1 }
  0x1b   : > { %420 = vmatprep.subr.bf16.mxu0 %v483_v2  ;;  %422 = vmatprep.mubr.msk.bf16.mxu0 %vm484_vm0, %v483_v2  ;;  %v456_v5 = vld [vmem:[%s215_s8] sm:$0xff]  }
  0x1c   : > { %455 = vset.pattern.permute.xlu0 %v485_v4  ;;  %421 = vmatpush3.bf16.msra.mxu0 %v456_v5  ;;  %v242_v6 = vld [vmem:[%s585_s1] sm:$0xf]  ;;  %s411_s12 = sshll.u32 %s238_s11, 2 }
  0x1d   : > { %248 = vperm.xlu0 %455, %v245_v3   ;;  %s240_s15 = scalar_lea.vmem %s587_s3, %s411_s12 }
  0x1f   : > { %423 = vmatmul.mubr.msk.bf16.vlgmr.msra.gmra.mxu0 %vm257_vm1, %v242_v6 }
  0x98   : > { %v249_v7 = vpop.permute.xlu0 %248 }
  0xdf   : > { %v295_v8 = vpop.f32.mrf.mxu0 }
  0xe0   : > { %v296_v9 = vadd.f32 %v295_v8, %v249_v7 }
  0xe1   : > { %v424_v10 = vpop.f32.mrf.mxu0 }
  0xe2   : > { %v301_v11 = vmax.f32 %v296_v9, 0.0  ;;  %307 = sbr.rel (%p414_p9) target bundleno = 233 (0xe9), region = 77 }
  0xe3   : > { %v298_v12 = vpop.f32.mrf.mxu0 }
  0xe4   : > { %v302_v13 = vpack.c.bf16 %v301_v11, %v301_v11 }
  0xe5   : > { %v425_v14 = vpop.f32.mrf.mxu0 }
  0xe6   : > { %303 = vst [vmem:[%s240_s15] sm:$0xf] %v302_v13 }
  0xe7   : > { %vm308_vm2 = vcmask 15360   ;;  %v486_v15 = vmov 0.0  }
  0xe8   : > { %309 = vst.msk [vmem:[%s588_s4] sm:$0xff] %vm308_vm2, %v486_v15 }
  0xe9 PF: > { %311 = vadd.xlane.f32.xlu0 %v301_v11  ;;  %v313_v16 = vmul.f32 %v301_v11, %v301_v11  ;;  %vm316_vm3 = vcmask 7168   ;;  %vm319_vm4 = vcmask 15360   ;;  %p415_p10 = scmp.ne.s32.totalorder %s526_s18, 1 }
  0xea   : > { %s487_s28 = smov (!%p415_p10), 1  }
  0xed   : > { %314 = vadd.xlane.f32.xlu0 %v313_v16 }
  0xef   : > { %v310_v18 = vld [vmem:[%s588_s4] sm:$0xff] }
 0x172   : > { %v312_v17 = vpop.xlane.xlu0 %311 }
 0x176   : > { %v315_v19 = vpop.xlane.xlu0 %314  ;;  %324 = sbr.rel (%p415_p10) target bundleno = 527 (0x20f), region = 81 }
 0x177   : > { %v317_v20 = vsel %vm316_vm3, %v312_v17, %v315_v19 }
 0x178   : > { %v318_v21 = vadd.f32 %v317_v20, %v310_v18 }
 0x17a   : > { %320 = vst.msk [vmem:[%s588_s4] sm:$0xff] %vm319_vm4, %v318_v21 }
 0x181   : > { %v325_v22 = vld [vmem:[%s588_s4] sm:$0xff] }
 0x182   : > { %v326_v23 = vmul.f32 0.00390625, %v325_v22 }
 0x184   : > { %v327_v24 = vmul.f32 %v326_v23, %v326_v23 }
 0x186   : > { %329 = vrot.lane.b32.xlu0 %v327_v24, %s487_s28 }
 0x1f8   : > { %v330_v25 = vpop.permute.xlu0 %329 }
 0x1f9   : > { %v332_v26 = vsub.f32 %v326_v23, %v330_v25 }
 0x1fb   : > { %v333_v27 = vmax.f32 %v332_v26, 0.0 }
 0x1fd   : > { %v334_v28 = vadd.f32 1e-05, %v333_v27 }
 0x1ff   : > { %457 = vrsqrt.f32 %v334_v28 }
 0x20c   : > { %v458_v29 = vpop.eup %457 }
 0x20d   : > { %v336_v30 = vsel %vm316_vm3, %v326_v23, %v458_v29 }
 0x20e   : > { %337 = vst.msk [vmem:[%s588_s4] sm:$0xff] %vm319_vm4, %v336_v30 }
 0x20f PF: > { %p12_p11 = scmp.ge.s32.totalorder %s528_s19, 4   ;;  %s589_s15 = smov %s477_s16 }
 0x210   : > { %s590_s16 = smov %s535_s22  ;;  %s591_s17 = smov %s528_s19 }
 0x211   :  { %14 = sbr.rel (!%p12_p11) target bundleno = 2 (0x2), region = 124 }

// kernel: net_forward.7
= control target key start
LH: loop header
LB: loop body
LE: loop exit
PB: predicated region body
PF: predicated region fallthrough
CT: control target
= control target key end

     0   :  { %8 = vsyncpa [#allocation3], 0  ;;  %s554_s0 = inlined_call_operand.vmem [shape: bf16[8,256], index: 0, kind: input, shape index: {}]   ;;  %s555_s1 = inlined_call_operand.vmem [shape: bf16[4,8], index: 1, kind: input, shape index: {}]   ;;  %s556_s2 = inlined_call_operand.vmem [shape: f32[4,1], index: 2, kind: input, shape index: {}]   ;;  %s557_s3 = inlined_call_operand.hbm [shape: f32[4,256], index: 3, kind: output, shape index: {}]  }
   0x1   :  { %10 = vsyncpa [#allocation3 + $0x1], 0  ;;  %s455_s12 = smov 0   ;;  %s457_s13 = smov 0  }
   0x2   :  { %s459_s14 = smov 0   ;;  %s461_s15 = smov 0  }
   0x3 LB: > { %s476_s16 = sadd.s32 4294967295, %s429_s15   ;;  %s303_s17 = sadd.s32 4294967294, %s429_s15   ;;  %s429_s15 = sphi %s461_s15, %s563_s15   ;;  %s425_s14 = sphi %s459_s14, %s562_s14   ;;  %s421_s13 = sphi %s457_s13, %s561_s13   ;;  %s417_s12 = sphi %s455_s12, %s560_s12  }
   0x4   : > { %s480_s18 = sadd.s32 1, %s429_s15   ;;  %s91_s19 = sadd.s32 1, %s425_s14 }
   0x5   : > { %s88_s20 = ssub.s32 %s429_s15, %s480_s18  ;;  %p101_p0 = scmp.ne.s32.totalorder %s425_s14, %s421_s13 }
   0x6   : > { %p89_p1 = scmp.eq.s32.totalorder %s88_s20, 0  ;;  %p102_p2 = scmp.eq.s32.totalorder %s476_s16, 1 }
   0x7   : > { %p107_p3 = scmp.ne.s32.totalorder %s421_s13, %s417_s12  ;;  %p108_p4 = scmp.eq.s32.totalorder %s303_s17, 1 }
   0x8   : > { %s491_s21 = scalar_select %p89_p1, %s425_s14, %s91_s19  }
   0x9   : > { %p493_p5 = por %p102_p2, %p101_p0  ;;  %p497_p6 = por %p108_p4, %p107_p3 }
   0xa   : > { %p306_p7 = scmp.ge.s32.totalorder %s429_s15, 1  ;;  %p139_p8 = scmp.lt.s32.totalorder %s429_s15, 3 }
   0xc   : > { %p140_p9 = pnand %p306_p7, %p139_p8 }
   0xd   : > { %p162_p10 = scmp.lt.s32.totalorder (!%p140_p9), %s476_s16, 1  ;;  %s159_s6 = sand.u32 (!%p140_p9), 1, %s421_s13  }
   0xe   : > { %143 = sbr.rel (%p140_p9) target bundleno = 270 (0x10e), region = 32  ;;  %s307_s7 = sshll.u32 (!%p140_p9), %s159_s6, 2 }
   0xf   : > { %s311_s8 = sshll.u32 (!%p140_p9), %s476_s16, 6  ;;  %s161_s9 = scalar_lea.vmem (!%p140_p9), [#allocation2], %s307_s7 }
  0x10   : > { %s244_s10 = sshll.u32 (!%p140_p9), %s161_s9, 4  ;;  %s519_s19 = scalar_lea.hbm (!%p140_p9), %s557_s3, %s311_s8  ;;  %s245_s10 = int_to_ptr.vmem [resolvable:$true] %s244_s10 }
  0x11   : > { %s231_s20 = scalar_lea.sflag (!%p140_p9), [#allocation3], %s159_s6  ;;  %s369_s24 = scalar_lea.vmem (!%p140_p9), %s245_s10, 64 }
  0x12   : > { %p370_p11 = scmp.ne.s32.totalorder (!%p140_p9), %s245_s10, %s369_s24  ;;  %s434_s25 = smov (!%p140_p9), [#allocation2]  }
  0x13   : > { %v431_v0 = vmov 0.0   ;;  %vm432_vm0 = vmmov 0   ;;  %v169_v1 = vld [vmem:[%s556_s2] sm:$0xf]  ;;  %s163_s26 = scalar_select %p162_p10, %s476_s16, 1  ;;  %v433_v2 = vmov 0  }
  0x14   : > { %316 = vmatprep.subr.bf16.mxu0 %v431_v0  ;;  %318 = vmatprep.mubr.msk.bf16.mxu0 %vm432_vm0, %v431_v0  ;;  %vm179_vm1 = vcmask 1043456   ;;  %v167_v5 = vld [vmem:[%s555_s1] sm:$0x3]  ;;  %vm175_vm2 = vcmask 64512   ;;  %p371_p12 = pnand %p370_p11, %p493_p5 }
  0x15   : > { %364 = vset.pattern.permute.xlu0 %v433_v2  ;;  %s308_s27 = sshll.u32 %s163_s26, 2  ;;  %s373_s26 = sshll.u32 %s434_s25, 4  ;;  %s374_s26 = int_to_ptr.vmem [resolvable:$false] %s373_s26 }
  0x16   : > { %172 = vperm.xlu0 %364, %v169_v1   ;;  %s165_s30 = scalar_lea.vmem %s554_s0, %s308_s27  ;;  %p372_p13 = pneg %p371_p12 }
  0x17   : > { %v168_v3 = vld [vmem:[%s165_s30] sm:$0xf]  ;;  %s375_s16 = scalar_lea.vmem %s374_s26, 128  ;;  %p376_p0 = scmp.lt.s32.totalorder %s245_s10, %s374_s26 }
  0x18   : > { %v181_v4 = vsel %vm179_vm1, %v168_v3, 0  ;;  %p377_p1 = scmp.lt.s32.totalorder %s375_s16, %s369_s24 }
  0x19   : > { %317 = vmatpush3.bf16.msra.mxu0 %v181_v4 }
  0x1a   : > { %p378_p2 = por %p377_p1, %p376_p0 }
  0x1c   : > { %319 = vmatmul.mubr.msk.bf16.vlgmr.msra.gmra.mxu0 %vm175_vm2, %v167_v5  ;;  %p379_p3 = pnand %p378_p2, %p372_p13 }
  0x91   : > { %v173_v6 = vpop.permute.xlu0 %172 }
  0xdc   : > { %v217_v7 = vpop.f32.mrf.mxu0 }
  0xdd   : > { %v218_v8 = vadd.f32 %v217_v7, %v173_v6 }
  0xde   : > { %v320_v9 = vpop.f32.mrf.mxu0 }
  0xdf   : > { %v223_v10 = vsub.f32 0.0, %v218_v8 }
  0xe0   : > { %v220_v11 = vpop.f32.mrf.mxu0 }
  0xe1   : > { %v224_v12 = vmul.f32 1.442695, %v223_v10 }
  0xe2   : > { %v321_v13 = vpop.f32.mrf.mxu0 }
  0xe3   : > { %365 = vpow2.f32 %v224_v12 }
  0xf0   : > { %v366_v14 = vpop.eup %365 }
  0xf1   : > { %v226_v15 = vadd.f32 1.0, %v366_v14 }
  0xf3   : > { %367 = vrcp.f32 %v226_v15 }
 0x100   : > { %v368_v16 = vpop.eup %367 }
 0x101   : > { %229 = vst [vmem:[%s161_s9] sm:$0xf] %v368_v16 }
 0x102   : > { %382 = shalt.err (!%p379_p3)
}
 0x103   : > { %s383_s27 = scalar_lea.hbm %s519_s19, 64  ;;  %s387_s30 = scalar_lea.hbm %s557_s3, 128 }
 0x104   : > { %p384_p4 = scmp.ne.s32.totalorder %s519_s19, %s383_s27  ;;  %p388_p9 = scmp.lt.s32.totalorder %s519_s19, %s557_s3 }
 0x105   : > { %p389_p10 = scmp.lt.s32.totalorder %s387_s30, %s383_s27 }
 0x106   : > { %p385_p7 = pnand %p384_p4, %p493_p5 }
 0x107   : > { %p390_p11 = por %p389_p10, %p388_p9 }
 0x108   : > { %p386_p8 = pneg %p385_p7 }
 0x10a   : > { %p391_p12 = pnand %p390_p11, %p386_p8 }
 0x10c   : > { %394 = shalt.err (!%p391_p12)
}
 0x10d   : > { %322 = dma.vmem_to_hbm [thread:$0]  (%p493_p5), %s245_s10, 64, %s519_s19, %s231_s20  }
 0x10e PF: > { %p328_p13 = scmp.ge.s32.totalorder %s429_s15, 2  ;;  %s256_s6 = sand.u32 1, %s417_s12  }
 0x10f   : > { %s257_s7 = scalar_lea.sflag [#allocation3], %s256_s6 }
 0x110   : > { %p325_p0 = pnand %p328_p13, %p497_p6 }
 0x112   : > { %p326_p1 = pneg %p325_p0 }
 0x114   : > { %412 = dma.done.wait (%p326_p1), %s257_s7, 64  }
 0x115   : > { %414 = vsyncadd (%p326_p1), %s257_s7, 4294967232  ;;  %p13_p2 = scmp.ge.s32.totalorder %s480_s18, 4   ;;  %s560_s12 = smov %s421_s13 }
 0x116   : > { %s561_s13 = smov %s425_s14  ;;  %s562_s14 = smov %s491_s21 }
 0x117   : > { %s563_s15 = smov %s480_s18  ;;  %15 = sbr.rel (!%p13_p2) target bundleno = 3 (0x3), region = 67 }
 0x11c   :  { %262 = vsyncpa [#allocation3], 1 }
 0x11d   :  { %264 = vsyncpa [#allocation3 + $0x1], 1 }

</bundles_post_ra>
